<compile_context>
chip_gen: v5e
topology: v5e:2x2
jax: 0.10.0
libtpu: 0.0.40
codegen_flags: <defaults>
</compile_context>

<pallas_src>
import functools

import jax
import jax.numpy as jnp
from jax.experimental import pallas as pl
from jax.experimental.pallas import tpu as pltpu


# ---------------------------------------------------------------------------
# Module hyper-parameters (small, consistent with the PyTorch module)
# ---------------------------------------------------------------------------
DIM = 32              # C
WINDOW_SIZE = 8       # N
RECEPTIVE_SIZE = 12   # M
NUM_HEADS = 4         # H
HEAD_DIM = 16         # D
HIDDEN = NUM_HEADS * HEAD_DIM
SCALE = HEAD_DIM ** (-0.5)
MAX_DISPARITY = WINDOW_SIZE - 1 + (RECEPTIVE_SIZE - WINDOW_SIZE) // 2

B = 2                 # batch
NW = 4                # number of windows
MASK_COUNT = 2        # number of boundary masks per side

NEG = -1.0e30         # large finite additive mask value (bf16-representable)


# ---------------------------------------------------------------------------
# Pallas kernel: all windows of one grid block, all heads, in one shot.
# ---------------------------------------------------------------------------
def _window_attn_kernel(xq_ref, xk_ref, add_ref,
                        wq_ref, bq_ref, wkv_ref, bkv_ref, wp_ref, bp_ref,
                        out_ref, *, num_heads, head_dim):
    H, D = num_heads, head_dim
    HD = H * D
    f32, bf16 = jnp.float32, jnp.bfloat16

    # ---- fused, lane-dense projections (2 MXU pushes; scale folded in) ----
    q = jnp.dot(xq_ref[...], wq_ref[...],
                preferred_element_type=f32) + bq_ref[...]        # (Tq, HD) f32
    kv = jnp.dot(xk_ref[...], wkv_ref[...],
                 preferred_element_type=f32) + bkv_ref[...]      # (Tk, 2HD) f32

    q = q.astype(bf16)
    k = kv[:, :HD].astype(bf16)                                  # (Tk, HD)
    v = kv[:, HD:].astype(bf16)                                  # (Tk, HD)

    # ---- (H, T, D) head views from aligned 16-lane slices ----------------
    # (equivalent to one einshape 't(hd)->htd'; stack/concat keep the
    #  relayout on well-trodden lowering paths)
    qh = jnp.stack([q[:, h * D:(h + 1) * D] for h in range(H)], axis=0)
    kh = jnp.stack([k[:, h * D:(h + 1) * D] for h in range(H)], axis=0)
    vh = jnp.stack([v[:, h * D:(h + 1) * D] for h in range(H)], axis=0)

    # ---- head-batched block-diagonal scores -------------------------------
    # add_ref already carries rel-pos bias + cls biases + boundary masks and a
    # -1e30 block-diagonal cross-window mask (precomputed, bf16).
    s = jnp.einsum('hnd,hmd->hnm', qh, kh,
                   preferred_element_type=f32)                   # (H, Tq, Tk)
    s = s + add_ref[...].astype(f32)

    # ---- softmax over keys (f32 math; reciprocal on the EUP) --------------
    s = s - jnp.max(s, axis=-1, keepdims=True)
    p = jnp.exp(s)
    p = p * pl.reciprocal(jnp.sum(p, axis=-1, keepdims=True), approx=True)

    o = jnp.einsum('hnm,hmd->hnd', p.astype(bf16), vh,
                   preferred_element_type=f32)                   # (H, Tq, D)

    # ---- merge heads back onto lanes; single fused output projection ------
    o_wide = jnp.concatenate([o[h] for h in range(H)], axis=1).astype(bf16)
    y = jnp.dot(o_wide, wp_ref[...],
                preferred_element_type=f32) + bp_ref[...]        # (Tq, C)
    out_ref[...] = y.astype(out_ref.dtype)


# ---------------------------------------------------------------------------
# Bias / mask assembly (pure JAX, reproduces the PyTorch index logic).
# Called ONCE, outside the jitted per-call path (hoisted).
# ---------------------------------------------------------------------------
def _relative_position_index():
    coords_x = jnp.arange(WINDOW_SIZE)
    coords_x_ = jnp.arange(RECEPTIVE_SIZE) - (RECEPTIVE_SIZE - WINDOW_SIZE) // 2
    rel = coords_x[:, None] - coords_x_[None, :] + MAX_DISPARITY
    return rel                                       # (N, M)


def _build_full_bias(params):
    n, m = WINDOW_SIZE + 1, RECEPTIVE_SIZE + 1
    rel_idx = _relative_position_index()
    rel_bias = params["rpb_table"][rel_idx.reshape(-1)]           # (N*M, H)
    rel_bias = rel_bias.reshape(WINDOW_SIZE, RECEPTIVE_SIZE, NUM_HEADS)
    rel_bias = jnp.transpose(rel_bias, (2, 0, 1))                 # (H, N, M)

    bias = jnp.zeros((NUM_HEADS, n, m), jnp.float32)
    bias = bias.at[:, 1:, 1:].set(rel_bias)
    bias = bias.at[:, :1, :1].set(params["cls_self"][0])          # (H,1,1)
    bias = bias.at[:, :1, 1:].set(params["cls_up"][0])            # (H,1,M)
    bias = bias.at[:, 1:, :1].set(params["cls_down"][0])          # (H,N,1)
    return bias


def _build_full_mask(mask_left, mask_right, nW, batch):
    # If nW < maskCount the left/right regions overlap; the element-wise
    # maximum reproduces torch's two sequential masked_fill_ (logical OR).
    n, m = WINDOW_SIZE + 1, RECEPTIVE_SIZE + 1
    mc = min(mask_left.shape[0], nW)
    mask_full = jnp.zeros((nW, n, m), jnp.float32)
    left = (mask_left[:mc] == 1).astype(jnp.float32)
    right = (mask_right[-mc:] == 1).astype(jnp.float32)
    mask_full = mask_full.at[:mc].set(jnp.maximum(mask_full[:mc], left))
    mask_full = mask_full.at[nW - mc:].set(jnp.maximum(mask_full[nW - mc:], right))
    mask_b = jnp.tile(mask_full[None], (batch, 1, 1, 1)).reshape(batch * nW, n, m)
    return mask_b


def prepare_window_attention(params, mask, nW, B_, G):
    """One-time preparation: kernel-ready weights + additive bias/mask tensor."""
    mask_left, mask_right = mask
    n, m = WINDOW_SIZE + 1, RECEPTIVE_SIZE + 1
    Bc = B_ // G
    H = NUM_HEADS

    bias = _build_full_bias(params)                                # (H, n, m)
    mask_b = _build_full_mask(mask_left, mask_right, nW, B_ // nW) # (B_, n, m)
    add_win = bias[None] + mask_b[:, None] * NEG                   # (B_, H, n, m)
    add5 = add_win.reshape(G, Bc, H, n, m).transpose(0, 2, 1, 3, 4)  # (G,H,Bc,n,m)
    eye = jnp.eye(Bc, dtype=jnp.float32)
    add6 = jnp.where(eye[None, None, :, None, :, None] > 0,
                     add5[:, :, :, :, None, :], NEG)               # (G,H,Bc,n,Bc,m)
    add = add6.reshape(G, H, Bc * n, Bc * m).astype(jnp.bfloat16)

    prep = {
        "add": add,                                                 # (G,H,Tq,Tk) bf16
        "wq": (params["wq"] * SCALE).astype(jnp.bfloat16),          # (C, HD)
        "bq": (params["bq"] * SCALE).astype(jnp.float32),           # (1, HD)
        "wkv": params["wkv"].astype(jnp.bfloat16),                  # (C, 2HD)
        "bkv": params["bkv"].astype(jnp.float32),                   # (1, 2HD)
        "wproj": params["wproj"].astype(jnp.bfloat16),              # (HD, C)
        "bproj": params["bproj"].astype(jnp.float32),               # (1, C)
    }
    return prep


def _pick_grid(batch_windows):
    """1 grid step on single-TC chips (v5e/v6e), 2 parallel steps on multi-TC."""
    try:
        kind = jax.devices()[0].device_kind.lower()
    except Exception:
        return 1
    multi_tc = any(tag in kind for tag in ("v7", "v5p", "v4", "v3"))
    return 2 if (multi_tc and batch_windows % 2 == 0 and batch_windows >= 2) else 1


# ---------------------------------------------------------------------------
# Wrapper calling pallas_call (jitted; all bias/mask work already hoisted).
# ---------------------------------------------------------------------------
def window_attention(x, x_, prep, *, G):
    B_, n, C = x.shape
    _, m, _ = x_.shape
    H, D = NUM_HEADS, HEAD_DIM
    HD = H * D
    Bc = B_ // G
    Tq, Tk = Bc * n, Bc * m

    # Pure reshapes: window b of grid step g occupies rows [b*n, (b+1)*n).
    xq = x.astype(jnp.bfloat16).reshape(G, Tq, C)
    xk = x_.astype(jnp.bfloat16).reshape(G, Tk, C)

    kernel = functools.partial(_window_attn_kernel, num_heads=H, head_dim=D)

    out = pl.pallas_call(
        kernel,
        out_shape=jax.ShapeDtypeStruct((G, Tq, C), jnp.float32),
        grid=(G,),
        in_specs=[
            pl.BlockSpec((None, Tq, C), lambda g: (g, 0, 0)),         # xq
            pl.BlockSpec((None, Tk, C), lambda g: (g, 0, 0)),         # xk
            pl.BlockSpec((None, H, Tq, Tk), lambda g: (g, 0, 0, 0)),  # additive bias/mask
            pl.BlockSpec((C, HD), lambda g: (0, 0)),                  # wq (scaled)
            pl.BlockSpec((1, HD), lambda g: (0, 0)),                  # bq (scaled)
            pl.BlockSpec((C, 2 * HD), lambda g: (0, 0)),              # wkv
            pl.BlockSpec((1, 2 * HD), lambda g: (0, 0)),              # bkv
            pl.BlockSpec((HD, C), lambda g: (0, 0)),                  # wproj
            pl.BlockSpec((1, C), lambda g: (0, 0)),                   # bproj
        ],
        out_specs=pl.BlockSpec((None, Tq, C), lambda g: (g, 0, 0)),
        compiler_params=pltpu.CompilerParams(
            dimension_semantics=("parallel",)),
    )(xq, xk, prep["add"], prep["wq"], prep["bq"], prep["wkv"], prep["bkv"],
      prep["wproj"], prep["bproj"])

    # (G, Bc*n, C) -> (B_, n, C) is a pure reshape (no transpose).
    return out.reshape(B_, n, C)


# ---------------------------------------------------------------------------
# Pure-JAX reference (mirrors the PyTorch forward, all f32)
# ---------------------------------------------------------------------------
def window_attention_ref(x, x_, mask, nW, params):
    mask_left, mask_right = mask
    B_, n, C = x.shape
    batch = B_ // nW

    q = x @ params["wq"] + params["bq"][0]
    kv = x_ @ params["wkv"] + params["bkv"][0]
    k, v = kv[..., :HIDDEN], kv[..., HIDDEN:]

    def heads(t):
        return t.reshape(B_, t.shape[1], NUM_HEADS, HEAD_DIM).transpose(0, 2, 1, 3)

    qh, kh, vh = heads(q), heads(k), heads(v)
    attn = jnp.einsum('bhnd,bhmd->bhnm', qh, kh) * SCALE
    attn = attn + _build_full_bias(params)[None]

    mask_b = _build_full_mask(mask_left, mask_right, nW, batch)    # (B_, n, m)
    neg = -jnp.finfo(jnp.float32).max
    attn = jnp.where(mask_b[:, None] != 0.0, neg, attn)
    attn = jax.nn.softmax(attn, axis=-1)

    o = jnp.einsum('bhnm,bhmd->bhnd', attn, vh)
    o = o.transpose(0, 2, 1, 3).reshape(B_, n, HIDDEN)
    return o @ params["wproj"] + params["bproj"][0]


# ---------------------------------------------------------------------------
# Deterministic parameter / input construction
# ---------------------------------------------------------------------------
def make_params(key):
    ks = jax.random.split(key, 10)
    p = {
        "rpb_table": 0.02 * jax.random.normal(ks[0], (2 * MAX_DISPARITY + 1, NUM_HEADS), jnp.float32),
        "cls_up":    0.02 * jax.random.normal(ks[1], (1, NUM_HEADS, 1, RECEPTIVE_SIZE), jnp.float32),
        "cls_down":  0.02 * jax.random.normal(ks[2], (1, NUM_HEADS, WINDOW_SIZE, 1), jnp.float32),
        "cls_self":  0.02 * jax.random.normal(ks[3], (1, NUM_HEADS, 1, 1), jnp.float32),
        "wq":    0.05 * jax.random.normal(ks[4], (DIM, HIDDEN), jnp.float32),
        "bq":    0.05 * jax.random.normal(ks[5], (1, HIDDEN), jnp.float32),
        "wkv":   0.05 * jax.random.normal(ks[6], (DIM, 2 * HIDDEN), jnp.float32),
        "bkv":   0.05 * jax.random.normal(ks[7], (1, 2 * HIDDEN), jnp.float32),
        "wproj": 0.05 * jax.random.normal(ks[8], (HIDDEN, DIM), jnp.float32),
        "bproj": 0.05 * jax.random.normal(ks[9], (1, DIM), jnp.float32),
    }
    return p


if __name__ == "__main__":
    key = jax.random.PRNGKey(0)
    kp, kx, kxr, kml, kmr = jax.random.split(key, 5)

    params = make_params(kp)

    B_ = B * NW
    n = WINDOW_SIZE + 1
    m = RECEPTIVE_SIZE + 1

    x = jax.random.normal(kx, (B_, n, DIM), jnp.float32)       # base tokens (+cls)
    x_ = jax.random.normal(kxr, (B_, m, DIM), jnp.float32)     # receptive tokens (+cls)

    # boundary masks: (maskCount, 1+windowSize, 1+receptiveSize), 0/1
    mask_left = (jax.random.uniform(kml, (MASK_COUNT, n, m)) < 0.2).astype(jnp.int32)
    mask_right = (jax.random.uniform(kmr, (MASK_COUNT, n, m)) < 0.2).astype(jnp.int32)
    # never mask the first key so no row is fully masked
    mask_left = mask_left.at[:, :, 0].set(0)
    mask_right = mask_right.at[:, :, 0].set(0)

    # ---- one-time (hoisted) preparation: weights, scale-fold, bias/mask ----
    G = _pick_grid(B_)
    prep = prepare_window_attention(params, (mask_left, mask_right), NW, B_, G)
    prep = jax.tree_util.tree_map(jax.block_until_ready, prep)

    fwd = jax.jit(functools.partial(window_attention, G=G))
    out = jax.block_until_ready(fwd(x, x_, prep))

    ref = jax.block_until_ready(
        window_attention_ref(x, x_, (mask_left, mask_right), NW, params))

    assert out.shape == (B_, n, DIM)
    max_diff = jnp.max(jnp.abs(out - ref))
    assert jnp.allclose(out, ref, atol=2e-2, rtol=2e-2), \
        f"max abs diff = {max_diff}"   # bf16 MXU operands vs f32 reference

    print("KERNEL_OK")
</pallas_src>

<mosaic_0001>
module attributes {stable_mosaic.version = 11 : i64} {
  func.func @_window_attn_kernel(%arg0: i32, %arg1: memref<1x72x32xbf16, #tpu.memory_space<vmem>>, %arg2: memref<1x104x32xbf16, #tpu.memory_space<vmem>>, %arg3: memref<1x4x72x104xbf16, #tpu.memory_space<vmem>>, %arg4: memref<32x64xbf16, #tpu.memory_space<vmem>>, %arg5: memref<1x64xf32, #tpu.memory_space<vmem>>, %arg6: memref<32x128xbf16, #tpu.memory_space<vmem>>, %arg7: memref<1x128xf32, #tpu.memory_space<vmem>>, %arg8: memref<64x32xbf16, #tpu.memory_space<vmem>>, %arg9: memref<1x32xf32, #tpu.memory_space<vmem>>, %arg10: memref<1x72x32xf32, #tpu.memory_space<vmem>>) attributes {dimension_semantics = [#tpu.dimension_semantics<parallel>], iteration_bounds = array<i64: 1>, scalar_prefetch = 0 : i64, scratch_operands = 0 : i64, tpu.core_type = #tpu.core_type<tc>, window_params = [{transform_indices = @transform_0, window_bounds = array<i64: 1, 72, 32>}, {transform_indices = @transform_1, window_bounds = array<i64: 1, 104, 32>}, {transform_indices = @transform_2, window_bounds = array<i64: 1, 4, 72, 104>}, {pipeline_mode = #tpu.pipeline_mode<synchronous>, transform_indices = @transform_3, window_bounds = array<i64: 32, 64>}, {pipeline_mode = #tpu.pipeline_mode<synchronous>, transform_indices = @transform_4, window_bounds = array<i64: 1, 64>}, {pipeline_mode = #tpu.pipeline_mode<synchronous>, transform_indices = @transform_5, window_bounds = array<i64: 32, 128>}, {pipeline_mode = #tpu.pipeline_mode<synchronous>, transform_indices = @transform_6, window_bounds = array<i64: 1, 128>}, {pipeline_mode = #tpu.pipeline_mode<synchronous>, transform_indices = @transform_7, window_bounds = array<i64: 64, 32>}, {pipeline_mode = #tpu.pipeline_mode<synchronous>, transform_indices = @transform_8, window_bounds = array<i64: 1, 32>}, {transform_indices = @transform_9, window_bounds = array<i64: 1, 72, 32>}]} {
    %c0 = arith.constant 0 : index
    %c0_0 = arith.constant 0 : index
    %c0_1 = arith.constant 0 : index
    %0 = vector.load %arg1[%c0, %c0_0, %c0_1] : memref<1x72x32xbf16, #tpu.memory_space<vmem>>, vector<1x72x32xbf16>
    %1 = vector.shape_cast %0 : vector<1x72x32xbf16> to vector<72x32xbf16>
    %c0_2 = arith.constant 0 : index
    %c0_3 = arith.constant 0 : index
    %2 = vector.load %arg4[%c0_2, %c0_3] : memref<32x64xbf16, #tpu.memory_space<vmem>>, vector<32x64xbf16>
    %cst = arith.constant dense<0.000000e+00> : vector<72x64xf32>
    %3 = tpu.matmul %1, %2, %cst {dimension_numbers = #tpu.dot_dimension_numbers<[1], [0], [0], [1], [0, 0, 1, 1], [], []>} : vector<72x32xbf16>, vector<32x64xbf16>, vector<72x64xf32> -> vector<72x64xf32>
    %c0_4 = arith.constant 0 : index
    %c0_5 = arith.constant 0 : index
    %4 = vector.load %arg5[%c0_4, %c0_5] : memref<1x64xf32, #tpu.memory_space<vmem>>, vector<1x64xf32>
    %5 = vector.broadcast %4 : vector<1x64xf32> to vector<72x64xf32>
    %6 = arith.addf %3, %5 : vector<72x64xf32>
    %c0_6 = arith.constant 0 : index
    %c0_7 = arith.constant 0 : index
    %c0_8 = arith.constant 0 : index
    %7 = vector.load %arg2[%c0_6, %c0_7, %c0_8] : memref<1x104x32xbf16, #tpu.memory_space<vmem>>, vector<1x104x32xbf16>
    %8 = vector.shape_cast %7 : vector<1x104x32xbf16> to vector<104x32xbf16>
    %c0_9 = arith.constant 0 : index
    %c0_10 = arith.constant 0 : index
    %9 = vector.load %arg6[%c0_9, %c0_10] : memref<32x128xbf16, #tpu.memory_space<vmem>>, vector<32x128xbf16>
    %cst_11 = arith.constant dense<0.000000e+00> : vector<104x128xf32>
    %10 = tpu.matmul %8, %9, %cst_11 {dimension_numbers = #tpu.dot_dimension_numbers<[1], [0], [0], [1], [0, 0, 1, 1], [], []>} : vector<104x32xbf16>, vector<32x128xbf16>, vector<104x128xf32> -> vector<104x128xf32>
    %c0_12 = arith.constant 0 : index
    %c0_13 = arith.constant 0 : index
    %11 = vector.load %arg7[%c0_12, %c0_13] : memref<1x128xf32, #tpu.memory_space<vmem>>, vector<1x128xf32>
    %12 = vector.broadcast %11 : vector<1x128xf32> to vector<104x128xf32>
    %13 = arith.addf %10, %12 : vector<104x128xf32>
    %14 = arith.truncf %6 : vector<72x64xf32> to vector<72x64xbf16>
    %15 = vector.extract_strided_slice %13 {offsets = [0, 0], sizes = [104, 64], strides = [1, 1]} : vector<104x128xf32> to vector<104x64xf32>
    %16 = arith.truncf %15 : vector<104x64xf32> to vector<104x64xbf16>
    %17 = vector.extract_strided_slice %13 {offsets = [0, 64], sizes = [104, 64], strides = [1, 1]} : vector<104x128xf32> to vector<104x64xf32>
    %18 = arith.truncf %17 : vector<104x64xf32> to vector<104x64xbf16>
    %19 = vector.extract_strided_slice %14 {offsets = [0, 0], sizes = [72, 16], strides = [1, 1]} : vector<72x64xbf16> to vector<72x16xbf16>
    %20 = vector.extract_strided_slice %14 {offsets = [0, 16], sizes = [72, 16], strides = [1, 1]} : vector<72x64xbf16> to vector<72x16xbf16>
    %21 = vector.extract_strided_slice %14 {offsets = [0, 32], sizes = [72, 16], strides = [1, 1]} : vector<72x64xbf16> to vector<72x16xbf16>
    %22 = vector.extract_strided_slice %14 {offsets = [0, 48], sizes = [72, 16], strides = [1, 1]} : vector<72x64xbf16> to vector<72x16xbf16>
    %23 = vector.shape_cast %19 : vector<72x16xbf16> to vector<1x72x16xbf16>
    %24 = vector.shape_cast %20 : vector<72x16xbf16> to vector<1x72x16xbf16>
    %25 = vector.shape_cast %21 : vector<72x16xbf16> to vector<1x72x16xbf16>
    %26 = vector.shape_cast %22 : vector<72x16xbf16> to vector<1x72x16xbf16>
    %27 = tpu.concatenate %23, %24, %25, %26 in 0 : vector<1x72x16xbf16>, vector<1x72x16xbf16>, vector<1x72x16xbf16>, vector<1x72x16xbf16> -> vector<4x72x16xbf16>
    %28 = vector.extract_strided_slice %16 {offsets = [0, 0], sizes = [104, 16], strides = [1, 1]} : vector<104x64xbf16> to vector<104x16xbf16>
    %29 = vector.extract_strided_slice %16 {offsets = [0, 16], sizes = [104, 16], strides = [1, 1]} : vector<104x64xbf16> to vector<104x16xbf16>
    %30 = vector.extract_strided_slice %16 {offsets = [0, 32], sizes = [104, 16], strides = [1, 1]} : vector<104x64xbf16> to vector<104x16xbf16>
    %31 = vector.extract_strided_slice %16 {offsets = [0, 48], sizes = [104, 16], strides = [1, 1]} : vector<104x64xbf16> to vector<104x16xbf16>
    %32 = vector.shape_cast %28 : vector<104x16xbf16> to vector<1x104x16xbf16>
    %33 = vector.shape_cast %29 : vector<104x16xbf16> to vector<1x104x16xbf16>
    %34 = vector.shape_cast %30 : vector<104x16xbf16> to vector<1x104x16xbf16>
    %35 = vector.shape_cast %31 : vector<104x16xbf16> to vector<1x104x16xbf16>
    %36 = tpu.concatenate %32, %33, %34, %35 in 0 : vector<1x104x16xbf16>, vector<1x104x16xbf16>, vector<1x104x16xbf16>, vector<1x104x16xbf16> -> vector<4x104x16xbf16>
    %37 = vector.extract_strided_slice %18 {offsets = [0, 0], sizes = [104, 16], strides = [1, 1]} : vector<104x64xbf16> to vector<104x16xbf16>
    %38 = vector.extract_strided_slice %18 {offsets = [0, 16], sizes = [104, 16], strides = [1, 1]} : vector<104x64xbf16> to vector<104x16xbf16>
    %39 = vector.extract_strided_slice %18 {offsets = [0, 32], sizes = [104, 16], strides = [1, 1]} : vector<104x64xbf16> to vector<104x16xbf16>
    %40 = vector.extract_strided_slice %18 {offsets = [0, 48], sizes = [104, 16], strides = [1, 1]} : vector<104x64xbf16> to vector<104x16xbf16>
    %41 = vector.shape_cast %37 : vector<104x16xbf16> to vector<1x104x16xbf16>
    %42 = vector.shape_cast %38 : vector<104x16xbf16> to vector<1x104x16xbf16>
    %43 = vector.shape_cast %39 : vector<104x16xbf16> to vector<1x104x16xbf16>
    %44 = vector.shape_cast %40 : vector<104x16xbf16> to vector<1x104x16xbf16>
    %45 = tpu.concatenate %41, %42, %43, %44 in 0 : vector<1x104x16xbf16>, vector<1x104x16xbf16>, vector<1x104x16xbf16>, vector<1x104x16xbf16> -> vector<4x104x16xbf16>
    "tpu.trace_start"() <{level = 10 : i32, message = "hnd,hmd->hnm"}> : () -> ()
    %cst_14 = arith.constant dense<0.000000e+00> : vector<4x72x104xf32>
    %46 = tpu.matmul %27, %36, %cst_14 {dimension_numbers = #tpu.dot_dimension_numbers<[2], [2], [1], [1], [0, 0, 0, 1, 1, 1], [0], [0]>} : vector<4x72x16xbf16>, vector<4x104x16xbf16>, vector<4x72x104xf32> -> vector<4x72x104xf32>
    "tpu.trace_stop"() : () -> ()
    %c0_15 = arith.constant 0 : index
    %c0_16 = arith.constant 0 : index
    %c0_17 = arith.constant 0 : index
    %c0_18 = arith.constant 0 : index
    %47 = vector.load %arg3[%c0_15, %c0_16, %c0_17, %c0_18] : memref<1x4x72x104xbf16, #tpu.memory_space<vmem>>, vector<1x4x72x104xbf16>
    %48 = vector.shape_cast %47 : vector<1x4x72x104xbf16> to vector<4x72x104xbf16>
    %49 = arith.extf %48 : vector<4x72x104xbf16> to vector<4x72x104xf32>
    %50 = arith.addf %46, %49 : vector<4x72x104xf32>
    %cst_19 = arith.constant dense<0xFF800000> : vector<4x72xf32>
    %51 = vector.multi_reduction <maximumf>, %50, %cst_19 [2] : vector<4x72x104xf32> to vector<4x72xf32>
    %52 = vector.shape_cast %51 : vector<4x72xf32> to vector<4x72x1xf32>
    %53 = vector.broadcast %52 : vector<4x72x1xf32> to vector<4x72x104xf32>
    %54 = arith.subf %50, %53 : vector<4x72x104xf32>
    %55 = math.exp %54 : vector<4x72x104xf32>
    %cst_20 = arith.constant dense<0.000000e+00> : vector<4x72xf32>
    %56 = vector.multi_reduction <add>, %55, %cst_20 [2] : vector<4x72x104xf32> to vector<4x72xf32>
    %57 = vector.shape_cast %56 : vector<4x72xf32> to vector<4x72x1xf32>
    %58 = tpu.reciprocal %57 {approx = true} : vector<4x72x1xf32> -> vector<4x72x1xf32>
    %59 = vector.broadcast %58 : vector<4x72x1xf32> to vector<4x72x104xf32>
    %60 = arith.mulf %55, %59 : vector<4x72x104xf32>
    %61 = arith.truncf %60 : vector<4x72x104xf32> to vector<4x72x104xbf16>
    "tpu.trace_start"() <{level = 10 : i32, message = "hnm,hmd->hnd"}> : () -> ()
    %cst_21 = arith.constant dense<0.000000e+00> : vector<4x72x16xf32>
    %62 = tpu.matmul %61, %45, %cst_21 {dimension_numbers = #tpu.dot_dimension_numbers<[2], [1], [1], [2], [0, 0, 0, 1, 1, 2], [0], [0]>} : vector<4x72x104xbf16>, vector<4x104x16xbf16>, vector<4x72x16xf32> -> vector<4x72x16xf32>
    "tpu.trace_stop"() : () -> ()
    %63 = vector.extract_strided_slice %62 {offsets = [0, 0, 0], sizes = [1, 72, 16], strides = [1, 1, 1]} : vector<4x72x16xf32> to vector<1x72x16xf32>
    %64 = vector.shape_cast %63 : vector<1x72x16xf32> to vector<72x16xf32>
    %65 = vector.extract_strided_slice %62 {offsets = [1, 0, 0], sizes = [1, 72, 16], strides = [1, 1, 1]} : vector<4x72x16xf32> to vector<1x72x16xf32>
    %66 = vector.shape_cast %65 : vector<1x72x16xf32> to vector<72x16xf32>
    %67 = vector.extract_strided_slice %62 {offsets = [2, 0, 0], sizes = [1, 72, 16], strides = [1, 1, 1]} : vector<4x72x16xf32> to vector<1x72x16xf32>
    %68 = vector.shape_cast %67 : vector<1x72x16xf32> to vector<72x16xf32>
    %69 = vector.extract_strided_slice %62 {offsets = [3, 0, 0], sizes = [1, 72, 16], strides = [1, 1, 1]} : vector<4x72x16xf32> to vector<1x72x16xf32>
    %70 = vector.shape_cast %69 : vector<1x72x16xf32> to vector<72x16xf32>
    %71 = tpu.concatenate %64, %66, %68, %70 in 1 : vector<72x16xf32>, vector<72x16xf32>, vector<72x16xf32>, vector<72x16xf32> -> vector<72x64xf32>
    %72 = arith.truncf %71 : vector<72x64xf32> to vector<72x64xbf16>
    %c0_22 = arith.constant 0 : index
    %c0_23 = arith.constant 0 : index
    %73 = vector.load %arg8[%c0_22, %c0_23] : memref<64x32xbf16, #tpu.memory_space<vmem>>, vector<64x32xbf16>
    %cst_24 = arith.constant dense<0.000000e+00> : vector<72x32xf32>
    %74 = tpu.matmul %72, %73, %cst_24 {dimension_numbers = #tpu.dot_dimension_numbers<[1], [0], [0], [1], [0, 0, 1, 1], [], []>} : vector<72x64xbf16>, vector<64x32xbf16>, vector<72x32xf32> -> vector<72x32xf32>
    %c0_25 = arith.constant 0 : index
    %c0_26 = arith.constant 0 : index
    %75 = vector.load %arg9[%c0_25, %c0_26] : memref<1x32xf32, #tpu.memory_space<vmem>>, vector<1x32xf32>
    %76 = vector.broadcast %75 : vector<1x32xf32> to vector<72x32xf32>
    %77 = arith.addf %74, %76 : vector<72x32xf32>
    %c0_27 = arith.constant 0 : index
    %c0_28 = arith.constant 0 : index
    %c0_29 = arith.constant 0 : index
    %78 = vector.load %arg10[%c0_27, %c0_28, %c0_29] : memref<1x72x32xf32, #tpu.memory_space<vmem>>, vector<1x72x32xf32>
    %79 = vector.shape_cast %78 : vector<1x72x32xf32> to vector<72x32xf32>
    %80 = vector.shape_cast %77 : vector<72x32xf32> to vector<1x72x32xf32>
    tpu.vector_store %arg10[%c0_27, %c0_28, %c0_29], %80 {strides = array<i32>} : memref<1x72x32xf32, #tpu.memory_space<vmem>>, vector<1x72x32xf32>,
    return
  }
  func.func @transform_0(%arg0: i32) -> (i32, i32, i32) {
    %c0_i32 = arith.constant 0 : i32
    %c0_i32_0 = arith.constant 0 : i32
    %c0_i32_1 = arith.constant 0 : i32
    return %arg0, %c0_i32, %c0_i32_0 : i32, i32, i32
  }
  func.func @transform_1(%arg0: i32) -> (i32, i32, i32) {
    %c0_i32 = arith.constant 0 : i32
    %c0_i32_0 = arith.constant 0 : i32
    %c0_i32_1 = arith.constant 0 : i32
    return %arg0, %c0_i32, %c0_i32_0 : i32, i32, i32
  }
  func.func @transform_2(%arg0: i32) -> (i32, i32, i32, i32) {
    %c0_i32 = arith.constant 0 : i32
    %c0_i32_0 = arith.constant 0 : i32
    %c0_i32_1 = arith.constant 0 : i32
    %c0_i32_2 = arith.constant 0 : i32
    return %arg0, %c0_i32, %c0_i32_0, %c0_i32_1 : i32, i32, i32, i32
  }
  func.func @transform_3(%arg0: i32) -> (i32, i32) {
    %c0_i32 = arith.constant 0 : i32
    %c0_i32_0 = arith.constant 0 : i32
    %c0_i32_1 = arith.constant 0 : i32
    return %c0_i32, %c0_i32_0 : i32, i32
  }
  func.func @transform_4(%arg0: i32) -> (i32, i32) {
    %c0_i32 = arith.constant 0 : i32
    %c0_i32_0 = arith.constant 0 : i32
    %c0_i32_1 = arith.constant 0 : i32
    return %c0_i32, %c0_i32_0 : i32, i32
  }
  func.func @transform_5(%arg0: i32) -> (i32, i32) {
    %c0_i32 = arith.constant 0 : i32
    %c0_i32_0 = arith.constant 0 : i32
    %c0_i32_1 = arith.constant 0 : i32
    return %c0_i32, %c0_i32_0 : i32, i32
  }
  func.func @transform_6(%arg0: i32) -> (i32, i32) {
    %c0_i32 = arith.constant 0 : i32
    %c0_i32_0 = arith.constant 0 : i32
    %c0_i32_1 = arith.constant 0 : i32
    return %c0_i32, %c0_i32_0 : i32, i32
  }
  func.func @transform_7(%arg0: i32) -> (i32, i32) {
    %c0_i32 = arith.constant 0 : i32
    %c0_i32_0 = arith.constant 0 : i32
    %c0_i32_1 = arith.constant 0 : i32
    return %c0_i32, %c0_i32_0 : i32, i32
  }
  func.func @transform_8(%arg0: i32) -> (i32, i32) {
    %c0_i32 = arith.constant 0 : i32
    %c0_i32_0 = arith.constant 0 : i32
    %c0_i32_1 = arith.constant 0 : i32
    return %c0_i32, %c0_i32_0 : i32, i32
  }
  func.func @transform_9(%arg0: i32) -> (i32, i32, i32) {
    %c0_i32 = arith.constant 0 : i32
    %c0_i32_0 = arith.constant 0 : i32
    %c0_i32_1 = arith.constant 0 : i32
    return %arg0, %c0_i32, %c0_i32_0 : i32, i32, i32
  }
}

</mosaic_0001>

<bundles_post_ra>
// kernel: window_attention.1
= control target key start
LH: loop header
LB: loop body
LE: loop exit
PB: predicated region body
PF: predicated region fallthrough
CT: control target
= control target key end

     0   :  { %vm85_vm0 = vcmask 261120   ;;  %vm546_vm1 = vcmask 130048   ;;  %vm925_vm2 = vcmask 850944   ;;  %vm1416_vm3 = vcmask 1043456   ;;  %s2446_s30 = smov 48   ;;  %s3792_s3 = inlined_call_operand.vmem [shape: bf16[32,64], index: 3, kind: input, shape index: {}]   ;;  %s3793_s5 = inlined_call_operand.vmem [shape: bf16[32,128], index: 5, kind: input, shape index: {}]   ;;  %s3794_s0 = inlined_call_operand.vmem [shape: bf16[1,72,32], index: 0, kind: input, shape index: {}]   ;;  %s3795_s1 = inlined_call_operand.vmem [shape: bf16[1,104,32], index: 1, kind: input, shape index: {}]   ;;  %s3796_s4 = inlined_call_operand.vmem [shape: f32[1,64], index: 4, kind: input, shape index: {}]   ;;  %s3797_s6 = inlined_call_operand.vmem [shape: f32[1,128], index: 6, kind: input, shape index: {}]   ;;  %s3798_s2 = inlined_call_operand.vmem [shape: bf16[1,4,72,104], index: 2, kind: input, shape index: {}]   ;;  %s3799_s7 = inlined_call_operand.vmem [shape: bf16[64,32], index: 7, kind: input, shape index: {}]   ;;  %s3800_s8 = inlined_call_operand.vmem [shape: f32[1,32], index: 8, kind: input, shape index: {}]   ;;  %s3801_s9 = inlined_call_operand.vmem [shape: f32[1,72,32], index: 9, kind: output, shape index: {}]  }
   0x1   :  { %v2108_v0 = vld [vmem:[%s3792_s3 + $0x8] sm:$0xff]  ;;  %v2107_v2 = vld [vmem:[%s3792_s3] sm:$0xff]  ;;  %v2105_v8 = vld [vmem:[%s3794_s0 + $0x10] sm:$0xff]  ;;  %s2443_s3 = smov 64   ;;  %vm1861_vm4 = vcmask 392192   ;;  %vm1912_vm5 = vcmask 523264  }
   0x2   :  { %v2116_v1 = vld [vmem:[%s3793_s5 + $0x8] sm:$0xff]  ;;  %107 = vmatpush.bf16.msra.mxu0 %v2108_v0  ;;  %v2115_v3 = vld [vmem:[%s3793_s5] sm:$0xff]  ;;  %2210 = vmatpush.bf16.msra.mxu3 %v2108_v0  ;;  %v2111_v9 = vld [vmem:[%s3795_s1 + $0x10] sm:$0xff] }
   0x3   :  { %227 = vmatpush.bf16.msra.mxu1 %v2116_v1  ;;  %v2103_v4 = vld [vmem:[%s3794_s0] sm:$0xff]  ;;  %v2104_v6 = vld [vmem:[%s3794_s0 + $0x8] sm:$0xff]  ;;  %v2112_v10 = vld [vmem:[%s3795_s1 + $0x18] sm:$0xff] }
   0x4   :  { %v2109_v5 = vld [vmem:[%s3795_s1] sm:$0xff]  ;;  %v2110_v7 = vld [vmem:[%s3795_s1 + $0x8] sm:$0xff]  ;;  %v2106_v12 = vld [vmem:[%s3794_s0 + $0x18] sm:$0xff] }
   0x5   :  { %v2113_v11 = vld [vmem:[%s3795_s1 + $0x20] sm:$0xff]  ;;  %v2114_v16 = vld [vmem:[%s3795_s1 + $0x28] sm:$0xff]  ;;  %v146_v17 = vld [vmem:[%s3795_s1 + $0x30] sm:$0xf]  ;;  %s2440_s1 = smov 96  }
   0x6   :  { %108 = vmatpush.bf16.msra.mxu0 %v2107_v2  ;;  %2211 = vmatpush.bf16.msra.mxu3 %v2107_v2  ;;  %v41_v13 = vld [vmem:[%s3794_s0 + $0x20] sm:$0xf]  ;;  %v180_v18 = vunpack.c.l.b16 %v146_v17 }
   0x7   :  { %228 = vmatpush.bf16.msra.mxu1 %v2115_v3  ;;  %v67_v14 = vunpack.c.l.b16 %v41_v13  ;;  %v2560_v20 = vld [vmem:[%s3796_s4] ss:$0 sm:$0xff]  ;;  %s2441_s4 = smov 112  }
   0x8   :  { %v187_v19 = vpack.c.b16 %v180_v18, %v180_v18  ;;  %v2565_v21 = vld [vmem:[%s3797_s6] ss:$0 sm:$0xff]  ;;  %s2442_s6 = smov 80  }
   0x9   :  { %1998 = vmatmul.msk.bf16.vlgmr.msra.gmra.mxu0 %vm85_vm0, %v2103_v4  ;;  %v72_v15 = vpack.c.b16 %v67_v14, %v67_v14 }
   0xa   :  { %2035 = vmatmul.msk.bf16.vlgmr.msra.gmra.mxu1 %vm85_vm0, %v2109_v5 }
   0xb   :  { %2002 = vmatmul.msk.bf16.vlgmr.msra.gmra.mxu3 %vm85_vm0, %v72_v15 }
  0x19   :  { %1999 = vmatmul.msk.bf16.gmra.mxu0 %vm85_vm0, %v2104_v6 }
  0x1a   :  { %2036 = vmatmul.msk.bf16.gmra.mxu1 %vm85_vm0, %v2110_v7 }
  0x29   :  { %2000 = vmatmul.msk.bf16.gmra.mxu0 %vm85_vm0, %v2105_v8 }
  0x2a   :  { %2037 = vmatmul.msk.bf16.gmra.mxu1 %vm85_vm0, %v2111_v9 }
  0x39   :  { %2001 = vmatmul.msk.bf16.gmra.mxu0 %vm85_vm0, %v2106_v12 }
  0x3a   :  { %2038 = vmatmul.msk.bf16.gmra.mxu1 %vm85_vm0, %v2112_v10 }
  0x4a   :  { %2039 = vmatmul.msk.bf16.gmra.mxu1 %vm85_vm0, %v2113_v11 }
  0x5a   :  { %2040 = vmatmul.msk.bf16.gmra.mxu1 %vm85_vm0, %v2114_v16 }
  0x6a   :  { %2041 = vmatmul.msk.bf16.gmra.mxu1 %vm85_vm0, %v187_v19 }
  0x86   :  { %v110_v22 = vpop.f32.mrf.mxu0 }
  0x87   :  { %v230_v23 = vpop.f32.mrf.mxu1  ;;  %v111_v24 = vadd.f32 %v2560_v20, %v110_v22 }
  0x88   :  { %v231_v25 = vadd.f32 %v2565_v21, %v230_v23 }
  0x89   :  { %v2569_v26 = vpack.c.bf16 %v111_v24, %v111_v24 }
  0x8a   :  { %v2571_v27 = vpack.c.bf16 %v231_v25, %v231_v25 }
  0x8b   :  { %313 = vrot.lane.b32.xlu1 %v2569_v26, %s2440_s1 }
  0x8c   :  { %388 = vrot.lane.b32.xlu2 %v2571_v27, %s2440_s1 }
  0x8e   :  { %v112_v28 = vpop.f32.mrf.mxu0  ;;  %v130_v14 = vpop.f32.mrf.mxu3 }
  0x8f   :  { %v232_v29 = vpop.f32.mrf.mxu1  ;;  %v113_v30 = vadd.f32 %v2560_v20, %v112_v28 }
  0x90   :  { %v233_v31 = vadd.f32 %v2565_v21, %v232_v29 }
  0x91   :  { %v2579_v32 = vpack.c.bf16 %v113_v30, %v113_v30 }
  0x92   :  { %v2581_v33 = vpack.c.bf16 %v233_v31, %v233_v31 }
  0x94   :  { %390 = vrot.lane.b32.xlu0 %v2581_v33, %s2440_s1  ;;  %315 = vrot.lane.b32.xlu2 %v2579_v32, %s2440_s1 }
  0x96   :  { %v115_v34 = vpop.f32.mrf.mxu0  ;;  %v132_v18 = vpop.f32.mrf.mxu3 }
  0x97   :  { %v235_v35 = vpop.f32.mrf.mxu1  ;;  %v116_v36 = vadd.f32 %v2560_v20, %v115_v34 }
  0x98   :  { %v236_v37 = vadd.f32 %v2565_v21, %v235_v35 }
  0x99   :  { %v2589_v38 = vpack.c.bf16 %v116_v36, %v116_v36 }
  0x9a   :  { %v2591_v39 = vpack.c.bf16 %v236_v37, %v236_v37 }
  0x9b   :  { %317 = vrot.lane.b32.xlu1 %v2589_v38, %s2440_s1 }
  0x9c   :  { %392 = vrot.lane.b32.xlu0 %v2591_v39, %s2440_s1 }
  0x9e   :  { %v117_v40 = vpop.f32.mrf.mxu0 }
  0x9f   :  { %v237_v41 = vpop.f32.mrf.mxu1  ;;  %v118_v42 = vadd.f32 %v2560_v20, %v117_v40 }
  0xa0   :  { %v238_v43 = vadd.f32 %v2565_v21, %v237_v41 }
  0xa1   :  { %v2599_v44 = vpack.c.bf16 %v118_v42, %v118_v42 }
  0xa2   :  { %v2601_v45 = vpack.c.bf16 %v238_v43, %v238_v43 }
  0xa3   :  { %319 = vrot.lane.b32.xlu2 %v2599_v44, %s2440_s1 }
  0xa4   :  { %394 = vrot.lane.b32.xlu1 %v2601_v45, %s2440_s1 }
  0xa6   :  { %v120_v46 = vpop.f32.mrf.mxu0 }
  0xa7   :  { %v240_v47 = vpop.f32.mrf.mxu1  ;;  %v121_v48 = vadd.f32 %v2560_v20, %v120_v46 }
  0xa8   :  { %v241_v49 = vadd.f32 %v2565_v21, %v240_v47 }
  0xa9   :  { %v2609_v50 = vpack.c.bf16 %v121_v48, %v121_v48 }
  0xaa   :  { %v2611_v51 = vpack.c.bf16 %v241_v49, %v241_v49  ;;  %v131_v49 = vadd.f32 %v2560_v20, %v130_v14 }
  0xab   :  { %321 = vrot.lane.b32.xlu2 %v2609_v50, %s2440_s1 }
  0xac   :  { %396 = vrot.lane.b32.xlu1 %v2611_v51, %s2440_s1 }
  0xae   :  { %v122_v52 = vpop.f32.mrf.mxu0 }
  0xaf   :  { %v242_v53 = vpop.f32.mrf.mxu1  ;;  %v123_v54 = vadd.f32 %v2560_v20, %v122_v52 }
  0xb0   :  { %v243_v55 = vadd.f32 %v2565_v21, %v242_v53  ;;  %v2704_v53 = vpack.c.bf16 %v131_v49, %v131_v49 }
  0xb1   :  { %v2619_v56 = vpack.c.bf16 %v123_v54, %v123_v54 }
  0xb2   :  { %v2621_v57 = vpack.c.bf16 %v243_v55, %v243_v55 }
  0xb3   :  { %323 = vrot.lane.b32.xlu0 %v2619_v56, %s2440_s1  ;;  %v517_v18 = vunpack.c.l.b16 %v2619_v56 }
  0xb4   :  { %398 = vrot.lane.b32.xlu2 %v2621_v57, %s2440_s1  ;;  %v531_v55 = vunpack.c.l.b16 %v2621_v57 }
  0xb6   :  { %v125_v28 = vpop.f32.mrf.mxu0 }
  0xb7   :  { %v245_v58 = vpop.f32.mrf.mxu1  ;;  %v126_v30 = vadd.f32 %v2560_v20, %v125_v28 }
  0xb8   :  { %v246_v59 = vadd.f32 %v2565_v21, %v245_v58 }
  0xb9   :  { %v2676_v35 = vpack.c.bf16 %v126_v30, %v126_v30 }
  0xba   :  { %v279_v60 = vpack.c.bf16 %v246_v59, %v246_v59 }
  0xbb   :  { %v518_v28 = vunpack.c.l.b16 %v2676_v35 }
  0xbc   :  { %400 = vrot.lane.b32.xlu2 %v279_v60, %s2440_s1  ;;  %v532_v0 = vunpack.c.l.b16 %v279_v60 }
  0xbe   :  { %v127_v41 = vpop.f32.mrf.mxu0 }
  0xbf   :  { %v247_v61 = vpop.f32.mrf.mxu1  ;;  %v128_v46 = vadd.f32 %v2560_v20, %v127_v41  ;;  %v530_v20 = vunpack.c.l.b16 %v2611_v51  ;;  %v520_v41 = vunpack.c.l.b16 %v2704_v53 }
  0xc0   :  { %v248_v62 = vadd.f32 %v2565_v21, %v247_v61 }
  0xc1   :  { %v2693_v48 = vpack.c.bf16 %v128_v46, %v128_v46  ;;  %v2714_v58 = vpack.c.b16 %v531_v55, %v530_v20 }
  0xc2   :  { %v2630_v63 = vpack.c.bf16 %v248_v62, %v248_v62  ;;  %v528_v62 = vunpack.c.l.b16 %v2591_v39 }
  0xc3   :  { %v569_v59 = vsel %vm546_vm1, %v2714_v58, 0 }
  0xc4   :  { %402 = vrot.lane.b32.xlu0 %v2630_v63, %s2440_s1  ;;  %v533_v1 = vunpack.c.l.b16 %v2630_v63 }
  0xc6   :  { %v2635_v2 = vpack.c.b16 %v533_v1, %v532_v0  ;;  %v526_v0 = vunpack.c.l.b16 %v2571_v27 }
  0xc7   :  { %v250_v3 = vpop.f32.mrf.mxu1 }
  0xc8   :  { %v251_v4 = vadd.f32 %v2565_v21, %v250_v3  ;;  %v572_v54 = vsel %vm546_vm1, %v2635_v2, 0 }
  0xca   :  { %v281_v5 = vpack.c.bf16 %v251_v4, %v251_v4 }
  0xcc   :  { %378 = vrot.lane.b32.xlu0 %v281_v5, %s2441_s4  ;;  %404 = vrot.lane.b32.xlu1 %v281_v5, %s2440_s1  ;;  %v534_v40 = vunpack.c.l.b16 %v281_v5 }
  0xcf   :  { %v252_v6 = vpop.f32.mrf.mxu1 }
  0xd0   :  { %v253_v7 = vadd.f32 %v2565_v21, %v252_v6  ;;  %v512_v6 = vunpack.c.l.b16 %v2569_v26 }
  0xd2   :  { %v282_v8 = vpack.c.bf16 %v253_v7, %v253_v7  ;;  %v513_v7 = vunpack.c.l.b16 %v2579_v32 }
  0xd4   :  { %406 = vrot.lane.b32.xlu2 %v282_v8, %s2440_s1  ;;  %380 = vrot.lane.b32.xlu1 %v282_v8, %s2441_s4  ;;  %v535_v37 = vunpack.c.l.b16 %v282_v8 }
  0xd6   :  { %v2684_v42 = vpack.c.b16 %v535_v37, %v534_v40 }
  0xd7   :  { %v255_v9 = vpop.f32.mrf.mxu1 }
  0xd8   :  { %v256_v10 = vadd.f32 %v2565_v21, %v255_v9  ;;  %v575_v47 = vsel %vm546_vm1, %v2684_v42, 0 }
  0xda   :  { %v283_v11 = vpack.c.bf16 %v256_v10, %v256_v10 }
  0xdc   :  { %408 = vrot.lane.b32.xlu0 %v283_v11, %s2440_s1  ;;  %430 = vrot.lane.b32.xlu2 %v281_v5, %s2442_s6  ;;  %v536_v29 = vunpack.c.l.b16 %v283_v11 }
  0xdf   :  { %v257_v12 = vpop.f32.mrf.mxu1 }
  0xe0   :  { %v258_v13 = vadd.f32 %v2565_v21, %v257_v12 }
  0xe2   :  { %v2647_v15 = vpack.c.bf16 %v258_v13, %v258_v13 }
  0xe4   :  { %382 = vrot.lane.b32.xlu0 %v283_v11, %s2441_s4  ;;  %372 = vrot.lane.b32.xlu2 %v2621_v57, %s2441_s4 }
  0xe5   :  { %410 = vrot.lane.b32.xlu1 %v2647_v15, %s2440_s1 }
  0xe6   :  { %v2674_v34 = vpop.permute.xlu2 %388 }
  0xe7   :  { %v260_v16 = vpop.f32.mrf.mxu1 }
  0xe8   :  { %v261_v17 = vadd.f32 %v2565_v21, %v260_v16  ;;  %v537_v21 = vunpack.c.l.b16 %v2647_v15 }
  0xea   :  { %v2655_v19 = vpack.c.bf16 %v261_v17, %v261_v17  ;;  %v2670_v31 = vpack.c.b16 %v537_v21, %v536_v29  ;;  %v519_v29 = vunpack.c.l.b16 %v2693_v48 }
  0xec   :  { %374 = vrot.lane.b32.xlu0 %v279_v60, %s2441_s4  ;;  %426 = vrot.lane.b32.xlu2 %v279_v60, %s2442_s6  ;;  %v538_v22 = vunpack.c.l.b16 %v2655_v19  ;;  %v578_v36 = vsel %vm546_vm1, %v2670_v31, 0  ;;  %v529_v60 = vunpack.c.l.b16 %v2601_v45 }
  0xed   :  { %434 = vrot.lane.b32.xlu1 %v283_v11, %s2442_s6  ;;  %v515_v11 = vunpack.c.l.b16 %v2599_v44 }
  0xee   :  { %v2661_v23 = vpack.c.b16 %v538_v22, %v538_v22  ;;  %v2688_v43 = vpop.permute.xlu2 %315 }
  0xef   :  { %v262_v24 = vpop.f32.mrf.mxu1 }
  0xf0   :  { %v581_v25 = vsel %vm546_vm1, %v2661_v23, 0 }
  0xf1   :  { %584 = vmatpush.bf16.xpose.msra.mxu2 %v581_v25 }
  0xf4   :  { %432 = vrot.lane.b32.xlu0 %v282_v8, %s2442_s6  ;;  %368 = vrot.lane.b32.xlu2 %v2601_v45, %s2441_s4  ;;  %v521_v8 = vpack.c.b16 %v513_v7, %v512_v6 }
  0xf5   :  { %376 = vrot.lane.b32.xlu1 %v2630_v63, %s2441_s4 }
  0xf9   :  { %585 = vmatpush.bf16.xpose.msra.mxu2 %v578_v36  ;;  %v524_v36 = vpack.c.b16 %v519_v29, %v518_v28 }
  0xfc   :  { %325 = vrot.lane.b32.xlu0 %v2676_v35, %s2440_s1  ;;  %362 = vrot.lane.b32.xlu2 %v2571_v27, %s2441_s4 }
  0xfd   :  { %370 = vrot.lane.b32.xlu1 %v2611_v51, %s2441_s4  ;;  %v2702_v52 = vpop.permute.xlu2 %319  ;;  %v2748_v4 = vpop.permute.xlu1 %313 }
 0x101   :  { %586 = vmatpush.bf16.xpose.msra.mxu2 %v575_v47 }
 0x104   :  { %428 = vrot.lane.b32.xlu0 %v2630_v63, %s2442_s6  ;;  %420 = vrot.lane.b32.xlu2 %v2601_v45, %s2442_s6  ;;  %v527_v45 = vunpack.c.l.b16 %v2581_v33 }
 0x105   :  { %327 = vrot.lane.b32.xlu1 %v2693_v48, %s2440_s1  ;;  %v2721_v61 = vpop.permute.xlu2 %321 }
 0x106   :  { %v2742_v3 = vpack.c.b16 %v527_v45, %v526_v0  ;;  %v2750_v5 = vpop.permute.xlu0 %390 }
 0x109   :  { %587 = vmatpush.bf16.xpose.msra.mxu2 %v572_v54 }
 0x10c   :  { %422 = vrot.lane.b32.xlu0 %v2611_v51, %s2442_s6  ;;  %329 = vrot.lane.b32.xlu2 %v2704_v53, %s2440_s1  ;;  %v2728_v51 = vpack.c.b16 %v529_v60, %v528_v62 }
 0x10d   :  { %366 = vrot.lane.b32.xlu1 %v2591_v39, %s2441_s4  ;;  %v2763_v9 = vpop.permute.xlu1 %317 }
 0x10e   :  { %v566_v63 = vsel %vm546_vm1, %v2728_v51, 0  ;;  %v2736_v1 = vpop.permute.xlu2 %398  ;;  %v2765_v10 = vpop.permute.xlu0 %392 }
 0x10f   :  { %v735_v54 = vunpack.c.l.b16 %v2765_v10 }
 0x111   :  { %588 = vmatpush.bf16.xpose.msra.mxu2 %v569_v59 }
 0x114   :  { %364 = vrot.lane.b32.xlu0 %v2581_v33, %s2441_s4  ;;  %331 = vrot.lane.b32.xlu2 %v2569_v26, %s2442_s6 }
 0x115   :  { %424 = vrot.lane.b32.xlu1 %v2621_v57, %s2442_s6  ;;  %v563_v57 = vsel %vm546_vm1, %v2742_v3, 0 }
 0x116   :  { %v395_v12 = vpop.permute.xlu1 %394 }
 0x119   :  { %589 = vmatpush.bf16.xpose.msra.mxu2 %v566_v63 }
 0x11c   :  { %301 = vrot.lane.b32.xlu2 %v2599_v44, %s2441_s4  ;;  %295 = vrot.lane.b32.xlu0 %v2569_v26, %s2441_s4 }
 0x11d   :  { %418 = vrot.lane.b32.xlu1 %v2591_v39, %s2442_s6  ;;  %v2760_v39 = vpop.permute.xlu2 %400 }
 0x11e   :  { %v739_v62 = vunpack.c.l.b16 %v2760_v39  ;;  %v738_v39 = vunpack.c.l.b16 %v2736_v1 }
 0x121   :  { %590 = vmatpush.bf16.xpose.msra.mxu2 %v563_v57 }
 0x124   :  { %303 = vrot.lane.b32.xlu2 %v2609_v50, %s2441_s4  ;;  %414 = vrot.lane.b32.xlu0 %v2571_v27, %s2442_s6  ;;  %v514_v27 = vunpack.c.l.b16 %v2589_v38 }
 0x125   :  { %384 = vrot.lane.b32.xlu1 %v2647_v15, %s2441_s4  ;;  %v2777_v13 = vpop.permute.xlu0 %323 }
 0x128   :  { %2042 = vmatmul.msk.bf16.vlgmr.msra.gmra.mxu2 %vm546_vm1, %v521_v8 }
 0x12c   :  { %341 = vrot.lane.b32.xlu2 %v2619_v56, %s2442_s6  ;;  %333 = vrot.lane.b32.xlu0 %v2579_v32, %s2442_s6 }
 0x12d   :  { %297 = vrot.lane.b32.xlu1 %v2579_v32, %s2441_s4  ;;  %v522_v32 = vpack.c.b16 %v515_v11, %v514_v27 }
 0x12e   :  { %v2773_v26 = vpop.permute.xlu2 %406 }
 0x12f   :  { %v742_v1 = vunpack.c.l.b16 %v2773_v26 }
 0x134   :  { %436 = vrot.lane.b32.xlu2 %v2647_v15, %s2442_s6  ;;  %335 = vrot.lane.b32.xlu0 %v2589_v38, %s2442_s6  ;;  %v2794_v15 = vpop.permute.xlu1 %396 }
 0x135   :  { %416 = vrot.lane.b32.xlu1 %v2581_v33, %s2442_s6  ;;  %v516_v33 = vunpack.c.l.b16 %v2609_v50 }
 0x136   :  { %v2785_v14 = vpop.permute.xlu2 %430  ;;  %v2788_v16 = vpop.permute.xlu0 %402 }
 0x137   :  { %v523_v25 = vpack.c.b16 %v517_v18, %v516_v33 }
 0x138   :  { %2043 = vmatmul.msk.bf16.gmra.mxu2 %vm546_vm1, %v522_v32 }
 0x13c   :  { %343 = vrot.lane.b32.xlu2 %v2676_v35, %s2442_s6  ;;  %305 = vrot.lane.b32.xlu0 %v2619_v56, %s2441_s4 }
 0x13d   :  { %299 = vrot.lane.b32.xlu1 %v2589_v38, %s2441_s4 }
 0x13e   :  { %v2798_v17 = vpop.permute.xlu2 %372  ;;  %v2806_v22 = vpop.permute.xlu1 %404 }
 0x13f   :  { %v2810_v24 = vpop.permute.xlu0 %378 }
 0x140   :  { %v638_v26 = vunpack.c.l.b16 %v2810_v24 }
 0x144   :  { %347 = vrot.lane.b32.xlu2 %v2704_v53, %s2442_s6  ;;  %412 = vrot.lane.b32.xlu0 %v2655_v19, %s2440_s1 }
 0x145   :  { %337 = vrot.lane.b32.xlu1 %v2599_v44, %s2442_s6 }
 0x146   :  { %v2812_v38 = vpop.permute.xlu2 %426  ;;  %v2823_v44 = vpop.permute.xlu1 %380 }
 0x148   :  { %2044 = vmatmul.msk.bf16.gmra.mxu2 %vm546_vm1, %v523_v25  ;;  %v639_v25 = vunpack.c.l.b16 %v2823_v44 }
 0x14c   :  { %438 = vrot.lane.b32.xlu2 %v2655_v19, %s2442_s6  ;;  %307 = vrot.lane.b32.xlu0 %v2676_v35, %s2441_s4 }
 0x14d   :  { %339 = vrot.lane.b32.xlu1 %v2609_v50, %s2442_s6 }
 0x14e   :  { %v409_v56 = vpop.permute.xlu0 %408  ;;  %v2821_v21 = vpop.permute.xlu2 %368 }
 0x14f   :  { %v743_v63 = vunpack.c.l.b16 %v409_v56 }
 0x154   :  { %1391 = vrot.lane.b32.xlu2 %v2670_v31, %s2443_s3  ;;  %345 = vrot.lane.b32.xlu0 %v2693_v48, %s2442_s6 }
 0x155   :  { %309 = vrot.lane.b32.xlu1 %v2693_v48, %s2441_s4  ;;  %v525_v48 = vpack.c.b16 %v520_v41, %v520_v41 }
 0x156   :  { %v2833_v50 = vpop.permute.xlu0 %382  ;;  %v2835_v30 = vpop.permute.xlu2 %362 }
 0x157   :  { %v411_v37 = vpop.permute.xlu1 %410  ;;  %v640_v44 = vunpack.c.l.b16 %v2833_v50 }
 0x158   :  { %2045 = vmatmul.msk.bf16.gmra.mxu2 %vm546_vm1, %v524_v36 }
 0x15c   :  { %1387 = vrot.lane.b32.xlu2 %v2635_v2, %s2443_s3  ;;  %386 = vrot.lane.b32.xlu0 %v2655_v19, %s2441_s4  ;;  %v734_v2 = vunpack.c.l.b16 %v2750_v5  ;;  %v736_v19 = vunpack.c.l.b16 %v395_v12  ;;  %v737_v5 = vunpack.c.l.b16 %v2794_v15 }
 0x15d   :  { %311 = vrot.lane.b32.xlu1 %v2704_v53, %s2441_s4  ;;  %v733_v53 = vunpack.c.l.b16 %v2674_v34  ;;  %v744_v34 = vunpack.c.l.b16 %v411_v37 }
 0x15e   :  { %v375_v31 = vpop.permute.xlu0 %374  ;;  %v2844_v35 = vpop.permute.xlu2 %420  ;;  %v2865_v20 = vpack.c.b16 %v736_v19, %v735_v54  ;;  %v2897_v10 = vpack.c.b16 %v738_v39, %v737_v5 }
 0x15f   :  { %v2846_v40 = vpop.permute.xlu1 %434  ;;  %v2863_v55 = vpack.c.b16 %v734_v2, %v733_v53  ;;  %v2881_v0 = vpack.c.b16 %v744_v34, %v743_v63  ;;  %v636_v7 = vunpack.c.l.b16 %v375_v31 }
 0x160   :  { %v846_v54 = vunpack.c.l.b16 %v2846_v40 }
 0x164   :  { %1381 = vrot.lane.b32.xlu2 %v2742_v3, %s2443_s3  ;;  %1385 = vrot.lane.b32.xlu0 %v2714_v58, %s2443_s3 }
 0x165   :  { %1389 = vrot.lane.b32.xlu1 %v2684_v42, %s2443_s3  ;;  %v740_v42 = vunpack.c.l.b16 %v2788_v16  ;;  %v635_v16 = vunpack.c.l.b16 %v2798_v17  ;;  %v2926_v17 = vpack.c.b16 %v639_v25, %v638_v26 }
 0x166   :  { %v2856_v46 = vpop.permute.xlu0 %432  ;;  %v2858_v47 = vpop.permute.xlu2 %329 }
 0x167   :  { %v377_v49 = vpop.permute.xlu1 %376  ;;  %v2879_v45 = vpack.c.b16 %v740_v42, %v739_v62  ;;  %v845_v26 = vunpack.c.l.b16 %v2856_v46 }
 0x168   :  { %2046 = vmatmul.msk.bf16.gmra.mxu2 %vm546_vm1, %v525_v48 }
 0x16c   :  { %1570 = vrot.lane.b32.xlu0 %v2863_v55, %s2443_s3  ;;  %1572 = vrot.lane.b32.xlu2 %v2865_v20, %s2443_s3 }
 0x16d   :  { %1383 = vrot.lane.b32.xlu1 %v2728_v51, %s2443_s3  ;;  %v637_v51 = vunpack.c.l.b16 %v377_v49 }
 0x16e   :  { %v2874_v58 = vpop.permute.xlu0 %325  ;;  %v2876_v59 = vpop.permute.xlu2 %331 }
 0x16f   :  { %v371_v60 = vpop.permute.xlu1 %370  ;;  %v2895_v8 = vpack.c.b16 %v637_v51, %v636_v7 }
 0x170   :  { %v634_v12 = vunpack.c.l.b16 %v371_v60 }
 0x172   :  { %v2912_v33 = vpack.c.b16 %v635_v16, %v634_v12 }
 0x174   :  { %1576 = vrot.lane.b32.xlu0 %v2879_v45, %s2443_s3  ;;  %1580 = vrot.lane.b32.xlu2 %v2881_v0, %s2443_s3 }
 0x175   :  { %1393 = vrot.lane.b32.xlu1 %v2661_v23, %s2443_s3  ;;  %v741_v23 = vunpack.c.l.b16 %v2806_v22 }
 0x176   :  { %v2889_v3 = vpop.permute.xlu0 %428  ;;  %v302_v57 = vpop.permute.xlu2 %301 }
 0x177   :  { %v2892_v6 = vpop.permute.xlu1 %327  ;;  %v2910_v15 = vpack.c.b16 %v742_v1, %v741_v23  ;;  %v619_v12 = vunpack.c.l.b16 %v302_v57 }
 0x17c   :  { %1482 = vrot.lane.b32.xlu0 %v2895_v8, %s2443_s3 }
 0x17d   :  { %1574 = vrot.lane.b32.xlu1 %v2897_v10, %s2443_s3 }
 0x17e   :  { %v2904_v27 = vpop.permute.xlu0 %422  ;;  %v304_v11 = vpop.permute.xlu2 %303 }
 0x17f   :  { %v2906_v32 = vpop.permute.xlu1 %366  ;;  %v620_v39 = vunpack.c.l.b16 %v304_v11 }
 0x184   :  { %1578 = vrot.lane.b32.xlu0 %v2910_v15, %s2443_s3 }
 0x185   :  { %1480 = vrot.lane.b32.xlu1 %v2912_v33, %s2443_s3 }
 0x186   :  { %v2918_v18 = vpop.permute.xlu0 %364  ;;  %v2920_v22 = vpop.permute.xlu2 %341 }
 0x187   :  { %v2923_v56 = vpop.permute.xlu1 %424 }
 0x18d   :  { %1484 = vrot.lane.b32.xlu1 %v2926_v17, %s2443_s3 }
 0x18e   :  { %v437_v28 = vpop.permute.xlu2 %436  ;;  %v2930_v29 = vpop.permute.xlu0 %295 }
 0x18f   :  { %v2932_v36 = vpop.permute.xlu1 %418  ;;  %v847_v24 = vunpack.c.l.b16 %v437_v28 }
 0x191   :  { %v854_v42 = vpack.c.b16 %v847_v24, %v846_v54 }
 0x196   :  { %v2934_v37 = vpop.permute.xlu2 %343  ;;  %v2936_v31 = vpop.permute.xlu0 %414 }
 0x197   :  { %v385_v41 = vpop.permute.xlu1 %384 }
 0x198   :  { %v641_v2 = vunpack.c.l.b16 %v385_v41  ;;  %v887_v41 = vsel %vm546_vm1, %v854_v42, 0 }
 0x19a   :  { %v2939_v19 = vpack.c.b16 %v641_v2, %v640_v44  ;;  %v844_v44 = vunpack.c.l.b16 %v2785_v14  ;;  %v842_v14 = vunpack.c.l.b16 %v2812_v38  ;;  %v840_v38 = vunpack.c.l.b16 %v2904_v27 }
 0x19b   :  { %v781_v27 = vsel %vm546_vm1, %v2910_v15, 0 }
 0x19c   :  { %1486 = vrot.lane.b32.xlu0 %v2939_v19, %s2443_s3  ;;  %v2970_v54 = vpack.c.b16 %v845_v26, %v844_v44  ;;  %v828_v44 = vunpack.c.l.b16 %v2934_v37 }
 0x19e   :  { %v2943_v48 = vpop.permute.xlu2 %347  ;;  %v2945_v49 = vpop.permute.xlu0 %333 }
 0x19f   :  { %v2947_v53 = vpop.permute.xlu1 %297 }
 0x1a4   :  { %1674 = vrot.lane.b32.xlu0 %v854_v42, %s2443_s3  ;;  %v884_v42 = vsel %vm546_vm1, %v2970_v54, 0 }
 0x1a6   :  { %v439_v34 = vpop.permute.xlu2 %438  ;;  %v2951_v50 = vpop.permute.xlu0 %335 }
 0x1a7   :  { %v848_v60 = vunpack.c.l.b16 %v439_v34  ;;  %v2953_v62 = vpop.permute.xlu1 %416  ;;  %v843_v34 = vunpack.c.l.b16 %v2889_v3 }
 0x1a9   :  { %v855_v63 = vpack.c.b16 %v848_v60, %v848_v60 }
 0x1ab   :  { %1676 = vrot.lane.b32.xlu2 %v855_v63, %s2443_s3  ;;  %v2956_v51 = vpop.f32.mrf.mxu2  ;;  %v890_v5 = vsel %vm546_vm1, %v855_v63, 0 }
 0x1ac   :  { %893 = vmatpush.bf16.xpose.msrb.mxu1 %v890_v5 }
 0x1ae   :  { %v306_v7 = vpop.permute.xlu0 %305 }
 0x1af   :  { %v621_v40 = vunpack.c.l.b16 %v306_v7  ;;  %v300_v23 = vpop.permute.xlu1 %299  ;;  %v2980_v7 = vpack.c.b16 %v843_v34, %v842_v14  ;;  %v838_v14 = vunpack.c.l.b16 %v2932_v36 }
 0x1b0   :  { %v618_v1 = vunpack.c.l.b16 %v300_v23  ;;  %v841_v23 = vunpack.c.l.b16 %v2923_v56 }
 0x1b1   :  { %v2959_v16 = vpack.c.b16 %v621_v40, %v620_v39  ;;  %v827_v39 = vunpack.c.l.b16 %v2920_v22  ;;  %v881_v26 = vsel %vm546_vm1, %v2980_v7, 0 }
 0x1b2   :  { %v2961_v25 = vpack.c.b16 %v619_v12, %v618_v1  ;;  %v784_v1 = vsel %vm546_vm1, %v2881_v0, 0  ;;  %v3001_v0 = vld [vmem:[%s3798_s2 + $0x8] sm:$0xff]  }
 0x1b3   :  { %v2964_v28 = vpop.f32.mrf.mxu2 }
 0x1b4   :  { %894 = vmatpush.bf16.xpose.msrb.mxu1 %v887_v41 }
 0x1b6   :  { %v413_v2 = vpop.permute.xlu0 %412 }
 0x1b7   :  { %v745_v24 = vunpack.c.l.b16 %v413_v2  ;;  %v2968_v11 = vpop.permute.xlu1 %337 }
 0x1b9   :  { %v752_v57 = vpack.c.b16 %v745_v24, %v745_v24  ;;  %v2992_v24 = vpack.c.b16 %v841_v23, %v840_v38 }
 0x1bb   :  { %1582 = vrot.lane.b32.xlu1 %v752_v57, %s2443_s3  ;;  %v2974_v60 = vpop.f32.mrf.mxu2  ;;  %v787_v46 = vsel %vm546_vm1, %v752_v57, 0  ;;  %v878_v37 = vsel %vm546_vm1, %v2992_v24, 0 }
 0x1bc   :  { %790 = vmatpush.bf16.xpose.msrb.mxu0 %v787_v46  ;;  %895 = vmatpush.bf16.xpose.msrb.mxu1 %v884_v42 }
 0x1be   :  { %v308_v63 = vpop.permute.xlu0 %307 }
 0x1bf   :  { %v340_v5 = vpop.permute.xlu1 %339  ;;  %v622_v57 = vunpack.c.l.b16 %v308_v63  ;;  %v2128_v63 = vunpack.c.h.bf16 %v3001_v0 }
 0x1c0   :  { %v826_v3 = vunpack.c.l.b16 %v340_v5  ;;  %v839_v5 = vunpack.c.l.b16 %v2844_v35 }
 0x1c2   :  { %v2983_v40 = vpack.c.b16 %v827_v39, %v826_v3  ;;  %v3015_v3 = vld [vmem:[%s3798_s2 + $0x10] sm:$0xff]   ;;  %v3022_v36 = vpack.c.b16 %v839_v5, %v838_v14 }
 0x1c3   :  { %v599_v12 = vpop.f32.mrf.mxu2 }
 0x1c4   :  { %791 = vmatpush.bf16.xpose.msrb.mxu0 %v784_v1  ;;  %896 = vmatpush.bf16.xpose.msrb.mxu1 %v881_v26  ;;  %v3019_v15 = vadd.f32 %v2128_v63, %v599_v12  ;;  %v2132_v26 = vunpack.c.h.bf16 %v3015_v3  ;;  %v875_v12 = vsel %vm546_vm1, %v3022_v36, 0  ;;  %v2122_v63 = vld [vmem:[%s3798_s2] sm:$0xff]  }
 0x1c6   :  { %v346_v41 = vpop.permute.xlu0 %345 }
 0x1c7   :  { %v829_v22 = vunpack.c.l.b16 %v346_v41  ;;  %v310_v2 = vpop.permute.xlu1 %309 }
 0x1c8   :  { %v623_v56 = vunpack.c.l.b16 %v310_v2 }
 0x1c9   :  { %v2994_v34 = vpack.c.b16 %v829_v22, %v828_v44  ;;  %v778_v44 = vsel %vm546_vm1, %v2879_v45, 0  ;;  %v837_v22 = vunpack.c.l.b16 %v2953_v62  ;;  %v3040_v45 = vld [vmem:[%s3798_s2 + $0x18] sm:$0xff]   ;;  %v836_v62 = vunpack.c.l.b16 %v2936_v31 }
 0x1ca   :  { %v2996_v46 = vpack.c.b16 %v623_v56, %v622_v57  ;;  %v935_v57 = vsel %vm925_vm2, %v3019_v15, -inf  ;;  %v3035_v56 = vpop.permute.xlu2 %1391 }
 0x1cb   :  { %v3003_v42 = vpop.f32.mrf.mxu2  ;;  %v3046_v14 = vpack.c.b16 %v837_v22, %v836_v62 }
 0x1cc   :  { %792 = vmatpush.bf16.xpose.msrb.mxu0 %v781_v27  ;;  %897 = vmatpush.bf16.xpose.msrb.mxu1 %v878_v37  ;;  %v2135_v37 = vunpack.c.l.bf16 %v3040_v45 }
 0x1cd   :  { %v872_v31 = vsel %vm546_vm1, %v3046_v14, 0 }
 0x1ce   :  { %v387_v39 = vpop.permute.xlu0 %386 }
 0x1cf   :  { %v642_v23 = vunpack.c.l.b16 %v387_v39  ;;  %v3017_v1 = vpop.permute.xlu1 %311  ;;  %v681_v39 = vsel %vm546_vm1, %v2939_v19, 0 }
 0x1d1   :  { %v649_v38 = vpack.c.b16 %v642_v23, %v642_v23  ;;  %v775_v23 = vsel %vm546_vm1, %v2897_v10, 0  ;;  %v822_v10 = vunpack.c.l.b16 %v2876_v59 }
 0x1d2   :  { %v3064_v19 = vpop.permute.xlu2 %1387 }
 0x1d3   :  { %1488 = vrot.lane.b32.xlu0 %v649_v38, %s2443_s3  ;;  %v604_v41 = vpop.f32.mrf.mxu2  ;;  %v684_v35 = vsel %vm546_vm1, %v649_v38, 0 }
 0x1d4   :  { %v3029_v2 = vadd.f32 %v2132_v26, %v604_v41  ;;  %687 = vmatpush.bf16.xpose.msrb.mxu3 %v684_v35  ;;  %793 = vmatpush.bf16.xpose.msrb.mxu0 %v778_v44  ;;  %v2123_v26 = vunpack.c.l.bf16 %v2122_v63  ;;  %v823_v41 = vunpack.c.l.b16 %v2945_v49  ;;  %v678_v49 = vsel %vm546_vm1, %v2926_v17, 0 }
 0x1d5   :  { %898 = vmatpush.bf16.xpose.msrb.mxu1 %v875_v12  ;;  %936 = vmax.xlane.f32.xlu2 %v935_v57 }
 0x1d6   :  { %v3060_v35 = vpop.permute.xlu0 %1385  ;;  %v3070_v12 = vadd.f32 %v2123_v26, %v2956_v51  ;;  %v831_v57 = vpack.c.b16 %v823_v41, %v822_v10  ;;  %v675_v26 = vsel %vm546_vm1, %v2895_v8, 0  ;;  %v825_v41 = vunpack.c.l.b16 %v2968_v11 }
 0x1d7   :  { %v3043_v27 = vpop.permute.xlu1 %1389  ;;  %v824_v10 = vunpack.c.l.b16 %v2951_v50  ;;  %v633_v50 = vunpack.c.l.b16 %v2821_v21 }
 0x1db   :  { %v607_v5 = vpop.f32.mrf.mxu2 }
 0x1dc   :  { %v3055_v38 = vadd.f32 %v2135_v37, %v607_v5  ;;  %688 = vmatpush.bf16.xpose.msrb.mxu3 %v681_v39  ;;  %794 = vmatpush.bf16.xpose.msrb.mxu0 %v775_v23  ;;  %v772_v37 = vsel %vm546_vm1, %v2865_v20, 0  ;;  %v926_v5 = vsel %vm925_vm2, %v3070_v12, -inf  ;;  %v3084_v23 = vpop.permute.xlu2 %1381  ;;  %v769_v20 = vsel %vm546_vm1, %v2863_v55, 0 }
 0x1dd   :  { %899 = vmatpush.bf16.xpose.msrb.mxu1 %v872_v31  ;;  %v719_v31 = vunpack.c.l.b16 %v2748_v4  ;;  %v2124_v4 = vunpack.c.h.bf16 %v2122_v63  ;;  %v2127_v63 = vunpack.c.l.bf16 %v3001_v0 }
 0x1de   :  { %v944_v44 = vsel %vm925_vm2, %v3055_v38, -inf  ;;  %v3081_v51 = vpop.permute.xlu0 %1570 }
 0x1df   :  { %v3066_v22 = vpop.permute.xlu1 %1383  ;;  %945 = vmax.xlane.f32.xlu2 %v944_v44  ;;  %v720_v44 = vunpack.c.l.b16 %v2688_v43  ;;  %v672_v43 = vsel %vm546_vm1, %v2912_v33, 0 }
 0x1e3   :  { %v3072_v62 = vpop.f32.mrf.mxu2 }
 0x1e4   :  { %2057 = vmatmul.msk.bf16.vlgmr.msrb.gmra.mxu1 %vm546_vm1, %v831_v57  ;;  %689 = vmatpush.bf16.xpose.msrb.mxu3 %v678_v49  ;;  %v728_v57 = vpack.c.b16 %v720_v44, %v719_v31  ;;  %v832_v49 = vpack.c.b16 %v825_v41, %v824_v10  ;;  %v630_v31 = vunpack.c.l.b16 %v2835_v30  ;;  %v3132_v44 = vadd.f32 %v2127_v63, %v2974_v60 }
 0x1e5   :  { %795 = vmatpush.bf16.xpose.msrb.mxu0 %v772_v37  ;;  %927 = vmax.xlane.f32.xlu1 %v926_v5  ;;  %v3100_v37 = vpop.permute.xlu2 %1572  ;;  %v632_v5 = vunpack.c.l.b16 %v2906_v32  ;;  %v631_v32 = vunpack.c.l.b16 %v2918_v18  ;;  %v722_v18 = vunpack.c.l.b16 %v2702_v52  ;;  %v2136_v30 = vunpack.c.h.bf16 %v3040_v45  ;;  %v3152_v45 = vld [vmem:[%s3798_s2 + $0x20] sm:$0xff]  }
 0x1e6   :  { %v3098_v8 = vpop.permute.xlu0 %1576  ;;  %v932_v10 = vsel %vm925_vm2, %v3132_v44, -inf  ;;  %v617_v60 = vunpack.c.l.b16 %v2947_v53  ;;  %v2139_v53 = vunpack.c.l.bf16 %v3152_v45 }
 0x1e7   :  { %v1394_v59 = vpop.permute.xlu1 %1393  ;;  %v3109_v11 = vpack.c.b16 %v633_v50, %v632_v5  ;;  %v3129_v41 = vpack.c.b16 %v631_v32, %v630_v31 }
 0x1e8   :  { %v1418_v39 = vsel %vm1416_vm3, %v1394_v59, 0  ;;  %v3112_v59 = vadd.f32 %v2124_v4, %v2964_v28  ;;  %v721_v28 = vunpack.c.l.b16 %v2763_v9 }
 0x1e9   :  { %1421 = vmatpush.bf16.msrb.mxu2 %v1418_v39  ;;  %v669_v33 = vsel %vm546_vm1, %v3109_v11, 0  ;;  %v666_v9 = vsel %vm546_vm1, %v3129_v41, 0 }
 0x1ea   :  { %v929_v21 = vsel %vm925_vm2, %v3112_v59, -inf  ;;  %v729_v0 = vpack.c.b16 %v722_v18, %v721_v28  ;;  %v2201_v28 = vld [vmem:[%s3798_s2 + $0x48] sm:$0xff]  }
 0x1eb   :  { %v3086_v17 = vpop.f32.mrf.mxu2  ;;  %v2159_v18 = vunpack.c.l.bf16 %v2201_v28 }
 0x1ec   :  { %690 = vmatpush.bf16.xpose.msrb.mxu3 %v675_v26  ;;  %v3163_v4 = vadd.f32 %v2139_v53, %v3086_v17 }
 0x1ed   :  { %796 = vmatpush.bf16.xpose.msrb.mxu0 %v769_v20  ;;  %1422 = vmatpush.bf16.msrb.mxu2 %v3035_v56  ;;  %v3121_v20 = vpop.permute.xlu2 %1580 }
 0x1ee   :  { %v3116_v26 = vpop.permute.xlu0 %1482 }
 0x1ef   :  { %v1575_v50 = vpop.permute.xlu1 %1574 }
 0x1f1   :  { %1423 = vmatpush.bf16.msrb.mxu2 %v3043_v27 }
 0x1f3   :  { %v614_v55 = vpop.f32.mrf.mxu2 }
 0x1f4   :  { %2052 = vmatmul.msk.bf16.vlgmr.msrb.gmra.mxu0 %vm546_vm1, %v728_v57  ;;  %2058 = vmatmul.msk.bf16.gmra.mxu1 %vm546_vm1, %v832_v49  ;;  %v3147_v55 = vadd.f32 %v2136_v30, %v3072_v62  ;;  %v723_v62 = vunpack.c.l.b16 %v2721_v61 }
 0x1f5   :  { %691 = vmatpush.bf16.xpose.msrb.mxu3 %v672_v43  ;;  %1424 = vmatpush.bf16.msrb.mxu2 %v3064_v19 }
 0x1f6   :  { %v1579_v57 = vpop.permute.xlu0 %1578 }
 0x1f7   :  { %v1481_v61 = vpop.permute.xlu1 %1480 }
 0x1f9   :  { %1425 = vmatpush.bf16.msrb.mxu2 %v3060_v35 }
 0x1fd   :  { %692 = vmatpush.bf16.xpose.msrb.mxu3 %v669_v33  ;;  %1426 = vmatpush.bf16.msrb.mxu2 %v3066_v22 }
 0x1fe   :  { %930 = vmax.xlane.f32.xlu0 %v929_v21 }
 0x201   :  { %1427 = vmatpush.bf16.msrb.mxu2 %v3084_v23 }
 0x204   :  { %2053 = vmatmul.msk.bf16.gmra.mxu0 %vm546_vm1, %v729_v0  ;;  %2059 = vmatmul.msk.bf16.gmra.mxu1 %vm546_vm1, %v2983_v40  ;;  %v616_v40 = vunpack.c.l.b16 %v2930_v29  ;;  %v724_v29 = vunpack.c.l.b16 %v2777_v13  ;;  %v950_v13 = vsel %vm925_vm2, %v3163_v4, -inf }
 0x205   :  { %693 = vmatpush.bf16.xpose.msrb.mxu3 %v666_v9  ;;  %v1677_v52 = vpop.permute.xlu2 %1676 }
 0x206   :  { %v1700_v49 = vsel %vm1416_vm3, %v1677_v52, 0  ;;  %933 = vmax.xlane.f32.xlu0 %v932_v10  ;;  %v625_v5 = vpack.c.b16 %v617_v60, %v616_v40 }
 0x207   :  { %2219 = vmatpush.bf16.msra.mxu1 %v1700_v49 }
 0x20c   :  { %2047 = vmatmul.msk.bf16.vlgmr.msrb.gmra.mxu3 %vm546_vm1, %v625_v5 }
 0x20d   :  { %2212 = vmatpush.bf16.msra.mxu3 %v1418_v39  ;;  %v947_v39 = vsel %vm925_vm2, %v3147_v55, -inf }
 0x20e   :  { %v1487_v43 = vpop.permute.xlu0 %1486  ;;  %948 = vmax.xlane.f32.xlu0 %v947_v39 }
 0x211   :  { %2213 = vmatpush.bf16.msra.mxu3 %v3035_v56  ;;  %v730_v56 = vpack.c.b16 %v724_v29, %v723_v62 }
 0x214   :  { %2054 = vmatmul.msk.bf16.gmra.mxu0 %vm546_vm1, %v730_v56  ;;  %2060 = vmatmul.msk.bf16.gmra.mxu1 %vm546_vm1, %v2994_v34  ;;  %v725_v34 = vunpack.c.l.b16 %v2874_v58 }
 0x215   :  { %2214 = vmatpush.bf16.msra.mxu3 %v3043_v27  ;;  %v726_v27 = vunpack.c.l.b16 %v2892_v6 }
 0x216   :  { %v1675_v32 = vpop.permute.xlu0 %1674  ;;  %951 = vmax.xlane.f32.xlu0 %v950_v13 }
 0x217   :  { %2220 = vmatpush.bf16.msra.mxu1 %v1675_v32  ;;  %v731_v17 = vpack.c.b16 %v726_v27, %v725_v34 }
 0x219   :  { %2215 = vmatpush.bf16.msra.mxu3 %v3064_v19  ;;  %v830_v19 = vunpack.c.l.b16 %v2943_v48 }
 0x21b   :  { %v835_v33 = vpack.c.b16 %v830_v19, %v830_v19 }
 0x21c   :  { %2048 = vmatmul.msk.bf16.gmra.mxu3 %vm546_vm1, %v2961_v25  ;;  %v727_v25 = vunpack.c.l.b16 %v2858_v47  ;;  %v624_v47 = vunpack.c.l.b16 %v3017_v1 }
 0x21d   :  { %2216 = vmatpush.bf16.msra.mxu3 %v3060_v35  ;;  %v1485_v35 = vpop.permute.xlu1 %1484 }
 0x21e   :  { %v732_v48 = vpack.c.b16 %v727_v25, %v727_v25 }
 0x221   :  { %2217 = vmatpush.bf16.msra.mxu3 %v3066_v22 }
 0x224   :  { %2055 = vmatmul.msk.bf16.gmra.mxu0 %vm546_vm1, %v731_v17  ;;  %2061 = vmatmul.msk.bf16.gmra.mxu1 %vm546_vm1, %v835_v33 }
 0x225   :  { %2218 = vmatpush.bf16.msra.mxu3 %v3084_v23  ;;  %v629_v23 = vpack.c.b16 %v624_v47, %v624_v47 }
 0x22c   :  { %2049 = vmatmul.msk.bf16.gmra.mxu3 %vm546_vm1, %v2959_v16 }
 0x22d   :  { %v1583_v22 = vpop.permute.xlu1 %1582 }
 0x22e   :  { %v1606_v6 = vsel %vm1416_vm3, %v1583_v22, 0 }
 0x22f   :  { %1609 = vmatpush.bf16.msra.mxu0 %v1606_v6  ;;  %v2203_v6 = vld [vmem:[%s3798_s2 + $0x58] sm:$0xff]  }
 0x230   :  { %v2168_v47 = vunpack.c.h.bf16 %v2203_v6 }
 0x233   :  { %1610 = vmatpush.bf16.msra.mxu0 %v3121_v20 }
 0x234   :  { %2056 = vmatmul.msk.bf16.gmra.mxu0 %vm546_vm1, %v732_v48 }
 0x237   :  { %1611 = vmatpush.bf16.msra.mxu0 %v1579_v57 }
 0x23b   :  { %1612 = vmatpush.bf16.msra.mxu0 %v3098_v8 }
 0x23c   :  { %2050 = vmatmul.msk.bf16.gmra.mxu3 %vm546_vm1, %v2996_v46  ;;  %v3199_v46 = vld [vmem:[%s3798_s2 + $0x68] sm:$0xff]  }
 0x23d   :  { %v2176_v1 = vunpack.c.h.bf16 %v3199_v46 }
 0x23f   :  { %1613 = vmatpush.bf16.msra.mxu0 %v1575_v50 }
 0x243   :  { %1614 = vmatpush.bf16.msra.mxu0 %v3100_v37 }
 0x245   :  { %v1489_v58 = vpop.permute.xlu0 %1488 }
 0x246   :  { %v1512_v16 = vsel %vm1416_vm3, %v1489_v58, 0 }
 0x247   :  { %1515 = vmatpush.bf16.msrb.mxu3 %v1512_v16  ;;  %1615 = vmatpush.bf16.msra.mxu0 %v3081_v51  ;;  %v2206_v51 = vld [vmem:[%s3798_s2 + $0x70] sm:$0xff]  }
 0x248   :  { %v2180_v52 = vunpack.c.h.bf16 %v2206_v51 }
 0x24b   :  { %1703 = vmatpush.bf16.msrb.mxu0 %v1700_v49  ;;  %1516 = vmatpush.bf16.msrb.mxu3 %v1487_v43  ;;  %v2140_v43 = vunpack.c.h.bf16 %v3152_v45  ;;  %v2202_v45 = vld [vmem:[%s3798_s2 + $0x50] sm:$0xff]  }
 0x24c   :  { %2051 = vmatmul.msk.bf16.gmra.mxu3 %vm546_vm1, %v629_v23  ;;  %v2163_v25 = vunpack.c.l.bf16 %v2202_v45  ;;  %v3257_v23 = vld [vmem:[%s3798_s2 + $0x88] sm:$0xff]  }
 0x24f   :  { %1704 = vmatpush.bf16.msrb.mxu0 %v1675_v32  ;;  %1517 = vmatpush.bf16.msrb.mxu3 %v1485_v35  ;;  %v2197_v32 = vld [vmem:[%s3798_s2 + $0x28] sm:$0xff]  }
 0x250   :  { %v2143_v19 = vunpack.c.l.bf16 %v2197_v32  ;;  %v2144_v16 = vunpack.c.h.bf16 %v2197_v32 }
 0x253   :  { %1518 = vmatpush.bf16.msrb.mxu3 %v3116_v26  ;;  %v2179_v26 = vunpack.c.l.bf16 %v2206_v51 }
 0x257   :  { %1519 = vmatpush.bf16.msrb.mxu3 %v1481_v61  ;;  %v2160_v61 = vunpack.c.h.bf16 %v2201_v28 }
 0x261   :  { %v901_v8 = vpop.f32.mrf.mxu1 }
 0x262   :  { %v3202_v37 = vadd.f32 %v2176_v1, %v901_v8  ;;  %v2192_v8 = vunpack.c.h.bf16 %v3257_v23 }
 0x264   :  { %v1007_v63 = vsel %vm925_vm2, %v3202_v37, -inf }
 0x265   :  { %1008 = vmax.xlane.f32.xlu1 %v1007_v63 }
 0x269   :  { %v903_v20 = vpop.f32.mrf.mxu1 }
 0x26a   :  { %v3209_v21 = vadd.f32 %v2179_v26, %v903_v20 }
 0x26c   :  { %v1010_v31 = vsel %vm925_vm2, %v3209_v21, -inf }
 0x26d   :  { %1011 = vmax.xlane.f32.xlu2 %v1010_v31  ;;  %v2198_v31 = vld [vmem:[%s3798_s2 + $0x30] sm:$0xff]  }
 0x271   :  { %v798_v0 = vpop.f32.mrf.mxu0  ;;  %v906_v9 = vpop.f32.mrf.mxu1 }
 0x272   :  { %v3216_v30 = vadd.f32 %v2159_v18, %v798_v0  ;;  %v3220_v60 = vadd.f32 %v2180_v52, %v906_v9  ;;  %v2164_v18 = vunpack.c.h.bf16 %v2202_v45  ;;  %v2208_v0 = vld [vmem:[%s3798_s2 + $0x80] sm:$0xff]  }
 0x274   :  { %v980_v10 = vsel %vm925_vm2, %v3216_v30, -inf  ;;  %v1013_v40 = vsel %vm925_vm2, %v3220_v60, -inf }
 0x275   :  { %981 = vmax.xlane.f32.xlu0 %v980_v10 }
 0x279   :  { %v800_v57 = vpop.f32.mrf.mxu0  ;;  %v3222_v49 = vpop.f32.mrf.mxu1 }
 0x27a   :  { %v3238_v34 = vadd.f32 %v2160_v61, %v800_v57  ;;  %v2188_v57 = vunpack.c.h.bf16 %v2208_v0 }
 0x27c   :  { %v983_v58 = vsel %vm925_vm2, %v3238_v34, -inf }
 0x27d   :  { %1014 = vmax.xlane.f32.xlu0 %v1013_v40 }
 0x281   :  { %v803_v5 = vpop.f32.mrf.mxu0  ;;  %v3226_v53 = vpop.f32.mrf.mxu1 }
 0x282   :  { %v3259_v1 = vadd.f32 %v2163_v25, %v803_v5  ;;  %v2147_v5 = vunpack.c.l.bf16 %v2198_v31  ;;  %v2167_v25 = vunpack.c.l.bf16 %v2203_v6 }
 0x284   :  { %v986_v52 = vsel %vm925_vm2, %v3259_v1, -inf }
 0x289   :  { %v805_v39 = vpop.f32.mrf.mxu0  ;;  %v3228_v29 = vpop.f32.mrf.mxu1 }
 0x28f   :  { %v695_v62 = vpop.f32.mrf.mxu3 }
 0x290   :  { %v3231_v50 = vadd.f32 %v2140_v43, %v695_v62  ;;  %v3280_v43 = vadd.f32 %v2164_v18, %v805_v39  ;;  %v2207_v62 = vld [vmem:[%s3798_s2 + $0x78] sm:$0xff]  }
 0x291   :  { %v808_v56 = vpop.f32.mrf.mxu0  ;;  %v916_v13 = vpop.f32.mrf.mxu1  ;;  %v2184_v6 = vunpack.c.h.bf16 %v2207_v62 }
 0x292   :  { %v953_v27 = vsel %vm925_vm2, %v3231_v50, -inf  ;;  %v3285_v32 = vadd.f32 %v2188_v57, %v916_v13 }
 0x293   :  { %954 = vmax.xlane.f32.xlu1 %v953_v27 }
 0x294   :  { %v1025_v13 = vsel %vm925_vm2, %v3285_v32, -inf }
 0x297   :  { %v697_v17 = vpop.f32.mrf.mxu3 }
 0x298   :  { %v3243_v33 = vadd.f32 %v2143_v19, %v697_v17  ;;  %v3289_v17 = vpop.xlane.xlu0 %930 }
 0x299   :  { %v810_v35 = vpop.f32.mrf.mxu0  ;;  %v3245_v22 = vpop.f32.mrf.mxu1 }
 0x29a   :  { %v956_v48 = vsel %vm925_vm2, %v3243_v33, -inf  ;;  %v3262_v51 = vadd.f32 %v2168_v47, %v810_v35  ;;  %v2183_v35 = vunpack.c.l.bf16 %v2207_v62  ;;  %v3300_v47 = vadd.f32 %v2167_v25, %v808_v56  ;;  %v2204_v56 = vld [vmem:[%s3798_s2 + $0x60] sm:$0xff]  }
 0x29b   :  { %957 = vmax.xlane.f32.xlu2 %v956_v48  ;;  %984 = vmax.xlane.f32.xlu1 %v983_v58  ;;  %v989_v48 = vsel %vm925_vm2, %v3280_v43, -inf }
 0x29c   :  { %v995_v40 = vsel %vm925_vm2, %v3262_v51, -inf  ;;  %v3298_v58 = vadd.f32 %v2183_v35, %v3222_v49  ;;  %v992_v18 = vsel %vm925_vm2, %v3300_v47, -inf  ;;  %v3323_v35 = vpop.xlane.xlu2 %936 }
 0x29f   :  { %v700_v63 = vpop.f32.mrf.mxu3 }
 0x2a0   :  { %v3264_v26 = vadd.f32 %v2144_v16, %v700_v63  ;;  %v2148_v63 = vunpack.c.h.bf16 %v2198_v31 }
 0x2a1   :  { %v813_v20 = vpop.f32.mrf.mxu0  ;;  %v921_v28 = vpop.f32.mrf.mxu1 }
 0x2a2   :  { %v3272_v9 = vadd.f32 %v2192_v8, %v921_v28  ;;  %v959_v10 = vsel %vm925_vm2, %v3264_v26, -inf  ;;  %v1016_v28 = vsel %vm925_vm2, %v3298_v58, -inf }
 0x2a3   :  { %987 = vmax.xlane.f32.xlu2 %v986_v52  ;;  %960 = vmax.xlane.f32.xlu0 %v959_v10  ;;  %v3306_v52 = vpop.xlane.xlu0 %933  ;;  %v3309_v10 = vadd.f32 %v2184_v6, %v3226_v53  ;;  %v2199_v53 = vld [vmem:[%s3798_s2 + $0x38] sm:$0xff]   ;;  %v2172_v6 = vunpack.c.h.bf16 %v2204_v56 }
 0x2a4   :  { %996 = vmax.xlane.f32.xlu1 %v995_v40  ;;  %v2187_v40 = vunpack.c.l.bf16 %v2208_v0 }
 0x2a7   :  { %v702_v61 = vpop.f32.mrf.mxu3 }
 0x2a8   :  { %v3287_v27 = vadd.f32 %v2147_v5, %v702_v61  ;;  %v2171_v5 = vunpack.c.l.bf16 %v2204_v56  ;;  %v1019_v61 = vsel %vm925_vm2, %v3309_v10, -inf }
 0x2a9   :  { %v815_v19 = vpop.f32.mrf.mxu0  ;;  %v923_v45 = vpop.f32.mrf.mxu1 }
 0x2aa   :  { %v962_v39 = vsel %vm925_vm2, %v3287_v27, -inf  ;;  %v2152_v45 = vunpack.c.h.bf16 %v2199_v53  ;;  %v3328_v0 = vadd.f32 %v2171_v5, %v813_v20  ;;  %v946_v20 = vpop.xlane.xlu2 %945  ;;  %v3340_v5 = vadd.f32 %v2172_v6, %v815_v19 }
 0x2ab   :  { %990 = vmax.xlane.f32.xlu2 %v989_v48  ;;  %963 = vmax.xlane.f32.xlu0 %v962_v39  ;;  %v949_v25 = vpop.xlane.xlu0 %948  ;;  %v3326_v48 = vadd.f32 %v2187_v40, %v3228_v29  ;;  %v2175_v29 = vunpack.c.l.bf16 %v3199_v46  ;;  %v2191_v46 = vunpack.c.l.bf16 %v3257_v23 }
 0x2ac   :  { %1026 = vmax.xlane.f32.xlu1 %v1025_v13  ;;  %v1001_v19 = vsel %vm925_vm2, %v3340_v5, -inf }
 0x2af   :  { %v705_v16 = vpop.f32.mrf.mxu3 }
 0x2b0   :  { %v3311_v49 = vadd.f32 %v2148_v63, %v705_v16  ;;  %v1041_v16 = vsub.f32 %v3147_v55, %v949_v25  ;;  %v2151_v63 = vunpack.c.l.bf16 %v2199_v53  ;;  %v1040_v53 = vsub.f32 %v3055_v38, %v946_v20 }
 0x2b1   :  { %v818_v8 = vpop.f32.mrf.mxu0  ;;  %v3358_v38 = vadd.f32 %v2191_v46, %v3245_v22 }
 0x2b2   :  { %v965_v62 = vsel %vm925_vm2, %v3311_v49, -inf  ;;  %v1084_v40 = vmul.f32 1.442695, %v1041_v16  ;;  %v3344_v56 = vadd.f32 %v2175_v29, %v818_v8 }
 0x2b3   :  { %1017 = vmax.xlane.f32.xlu2 %v1016_v28  ;;  %993 = vmax.xlane.f32.xlu0 %v992_v18  ;;  %v1022_v28 = vsel %vm925_vm2, %v3326_v48, -inf  ;;  %v998_v18 = vsel %vm925_vm2, %v3328_v0, -inf  ;;  %v952_v16 = vpop.xlane.xlu0 %951 }
 0x2b4   :  { %2296 = vpow2.f32 %v1084_v40  ;;  %v1004_v8 = vsel %vm925_vm2, %v3344_v56, -inf }
 0x2b7   :  { %v707_v31 = vpop.f32.mrf.mxu3 }
 0x2b8   :  { %v3342_v55 = vadd.f32 %v2151_v63, %v707_v31 }
 0x2b9   :  { %v820_v57 = vpop.f32.mrf.mxu0 }
 0x2ba   :  { %v968_v25 = vsel %vm925_vm2, %v3342_v55, -inf  ;;  %v3362_v63 = vpop.eup %2296 }
 0x2bb   :  { %966 = vmax.xlane.f32.xlu2 %v965_v62  ;;  %1020 = vmax.xlane.f32.xlu0 %v1019_v61  ;;  %v2200_v62 = vld [vmem:[%s3798_s2 + $0x40] sm:$0xff]   ;;  %v1163_v22 = vsel %vm925_vm2, %v3362_v63, 0.0  ;;  %s2444_s2 = smov 16  }
 0x2bc   :  { %v2156_v31 = vunpack.c.h.bf16 %v2200_v62 }
 0x2bf   :  { %v710_v39 = vpop.f32.mrf.mxu3 }
 0x2c0   :  { %v3330_v13 = vadd.f32 %v2152_v45, %v710_v39  ;;  %v2155_v45 = vunpack.c.l.bf16 %v2200_v62  ;;  %v1082_v39 = vmul.f32 1.442695, %v1040_v53 }
 0x2c2   :  { %v971_v57 = vsel %vm925_vm2, %v3330_v13, -inf  ;;  %2298 = vpow2.f32 %v1082_v39 }
 0x2c3   :  { %1023 = vmax.xlane.f32.xlu2 %v1022_v28  ;;  %999 = vmax.xlane.f32.xlu0 %v998_v18  ;;  %v1042_v18 = vsub.f32 %v3163_v4, %v952_v16 }
 0x2c4   :  { %972 = vmax.xlane.f32.xlu1 %v971_v57  ;;  %v1028_v57 = vsel %vm925_vm2, %v3358_v38, -inf }
 0x2c5   :  { %v1086_v20 = vmul.f32 1.442695, %v1042_v18 }
 0x2c7   :  { %v712_v61 = vpop.f32.mrf.mxu3  ;;  %2300 = vpow2.f32 %v1086_v20 }
 0x2c8   :  { %v3360_v23 = vadd.f32 %v2155_v45, %v712_v61  ;;  %v3373_v40 = vpop.eup %2298 }
 0x2c9   :  { %v1160_v4 = vsel %vm925_vm2, %v3373_v40, 0.0 }
 0x2ca   :  { %v974_v29 = vsel %vm925_vm2, %v3360_v23, -inf }
 0x2cb   :  { %969 = vmax.xlane.f32.xlu2 %v968_v25  ;;  %1002 = vmax.xlane.f32.xlu0 %v1001_v19 }
 0x2cc   :  { %1005 = vmax.xlane.f32.xlu1 %v1004_v8 }
 0x2cd   :  { %v3377_v61 = vpop.eup %2300 }
 0x2ce   :  { %v1166_v53 = vsel %vm925_vm2, %v3377_v61, 0.0 }
 0x2cf   :  { %v715_v6 = vpop.f32.mrf.mxu3 }
 0x2d0   :  { %v3364_v28 = vadd.f32 %v2156_v31, %v715_v6  ;;  %v3386_v31 = vpop.xlane.xlu1 %927 }
 0x2d3   :  { %1029 = vmax.xlane.f32.xlu2 %v1028_v57  ;;  %975 = vmax.xlane.f32.xlu0 %v974_v29 }
 0x2d4   :  { %1164 = vadd.xlane.f32.xlu1 %v1163_v22 }
 0x2d7   :  { %v717_v62 = vpop.f32.mrf.mxu3 }
 0x2d8   :  { %v1009_v39 = vpop.xlane.xlu1 %1008 }
 0x2db   :  { %1161 = vadd.xlane.f32.xlu0 %v1160_v4 }
 0x2e0   :  { %v3388_v16 = vpop.xlane.xlu2 %1011 }
 0x2e3   :  { %1167 = vadd.xlane.f32.xlu0 %v1166_v53  ;;  %v1061_v53 = vsub.f32 %v3202_v37, %v1009_v39 }
 0x2e8   :  { %v982_v46 = vpop.xlane.xlu0 %981 }
 0x2e9   :  { %v1052_v45 = vsub.f32 %v3216_v30, %v982_v46 }
 0x2eb   :  { %v1106_v25 = vmul.f32 1.442695, %v1052_v45 }
 0x2ed   :  { %2302 = vpow2.f32 %v1106_v25 }
 0x2f0   :  { %v3391_v29 = vpop.xlane.xlu0 %1014 }
 0x2f3   :  { %v3382_v19 = vpop.eup %2302 }
 0x2f4   :  { %v1196_v8 = vsel %vm925_vm2, %v3382_v19, 0.0 }
 0x2f5   :  { %1197 = vadd.xlane.f32.xlu1 %v1196_v8 }
 0x306   :  { %v955_v6 = vpop.xlane.xlu1 %954 }
 0x307   :  { %v1043_v18 = vsub.f32 %v3231_v50, %v955_v6  ;;  %v1124_v50 = vmul.f32 1.442695, %v1061_v53 }
 0x309   :  { %v1088_v57 = vmul.f32 1.442695, %v1043_v18 }
 0x30b   :  { %2304 = vpow2.f32 %v1088_v57 }
 0x30e   :  { %v958_v30 = vpop.xlane.xlu2 %957  ;;  %v985_v22 = vpop.xlane.xlu1 %984 }
 0x30f   :  { %v1044_v20 = vsub.f32 %v3243_v33, %v958_v30  ;;  %v1053_v62 = vsub.f32 %v3238_v34, %v985_v22 }
 0x311   :  { %v3395_v4 = vpop.eup %2304  ;;  %v1090_v46 = vmul.f32 1.442695, %v1044_v20  ;;  %v1108_v45 = vmul.f32 1.442695, %v1053_v62 }
 0x312   :  { %v1169_v25 = vsel %vm925_vm2, %v3395_v4, 0.0 }
 0x313   :  { %2306 = vpow2.f32 %v1090_v46  ;;  %1170 = vadd.xlane.f32.xlu2 %v1169_v25 }
 0x314   :  { %2308 = vpow2.f32 %v1108_v45 }
 0x315   :  { %2310 = vpow2.f32 %v1124_v50 }
 0x316   :  { %v988_v8 = vpop.xlane.xlu2 %987  ;;  %v961_v6 = vpop.xlane.xlu0 %960 }
 0x317   :  { %v1054_v18 = vsub.f32 %v3259_v1, %v988_v8  ;;  %v1045_v57 = vsub.f32 %v3264_v26, %v961_v6  ;;  %v3421_v50 = vpop.xlane.xlu1 %996 }
 0x319   :  { %v3401_v33 = vpop.eup %2306  ;;  %v1110_v34 = vmul.f32 1.442695, %v1054_v18  ;;  %v1092_v22 = vmul.f32 1.442695, %v1045_v57 }
 0x31a   :  { %v3404_v37 = vpop.eup %2308  ;;  %v1172_v39 = vsel %vm925_vm2, %v3401_v33, 0.0 }
 0x31b   :  { %2312 = vpow2.f32 %v1110_v34  ;;  %1173 = vadd.xlane.f32.xlu1 %v1172_v39  ;;  %v1199_v30 = vsel %vm925_vm2, %v3404_v37, 0.0  ;;  %v3412_v62 = vpop.eup %2310 }
 0x31c   :  { %1200 = vadd.xlane.f32.xlu2 %v1199_v30  ;;  %2314 = vpow2.f32 %v1092_v22  ;;  %v1223_v45 = vsel %vm925_vm2, %v3412_v62, 0.0 }
 0x31e   :  { %v991_v20 = vpop.xlane.xlu2 %990  ;;  %v3410_v1 = vpop.xlane.xlu0 %963 }
 0x31f   :  { %v1055_v53 = vsub.f32 %v3280_v43, %v991_v20  ;;  %v2131_v43 = vunpack.c.l.bf16 %v3015_v3  ;;  %v3437_v22 = vpop.xlane.xlu1 %1026 }
 0x321   :  { %v3415_v26 = vpop.eup %2312  ;;  %v1112_v46 = vmul.f32 1.442695, %v1055_v53  ;;  %v3433_v39 = vadd.f32 %v2131_v43, %v3003_v42 }
 0x322   :  { %v1202_v25 = vsel %vm925_vm2, %v3415_v26, 0.0  ;;  %v3423_v6 = vpop.eup %2314 }
 0x323   :  { %2316 = vpow2.f32 %v1112_v46  ;;  %1224 = vadd.xlane.f32.xlu1 %v1223_v45  ;;  %v1175_v57 = vsel %vm925_vm2, %v3423_v6, 0.0  ;;  %v938_v20 = vsel %vm925_vm2, %v3433_v39, -inf }
 0x324   :  { %1203 = vadd.xlane.f32.xlu2 %v1202_v25 }
 0x326   :  { %v994_v8 = vpop.xlane.xlu0 %993 }
 0x329   :  { %v3425_v18 = vpop.eup %2316 }
 0x32a   :  { %v1205_v34 = vsel %vm925_vm2, %v3425_v18, 0.0 }
 0x32b   :  { %1206 = vadd.xlane.f32.xlu0 %v1205_v34  ;;  %1176 = vadd.xlane.f32.xlu1 %v1175_v57 }
 0x32e   :  { %v3435_v30 = vpop.xlane.xlu0 %1020 }
 0x333   :  { %939 = vmax.xlane.f32.xlu1 %v938_v20 }
 0x336   :  { %v3441_v3 = vpop.xlane.xlu0 %999 }
 0x337   :  { %v3443_v53 = vpop.xlane.xlu1 %972 }
 0x33c   :  { %1672 = vrot.lane.b32.xlu2 %v2970_v54, %s2443_s3 }
 0x33e   :  { %v1003_v46 = vpop.xlane.xlu0 %1002 }
 0x33f   :  { %v1059_v45 = vsub.f32 %v3340_v5, %v1003_v46  ;;  %v1006_v42 = vpop.xlane.xlu1 %1005  ;;  %1478 = vrot.lane.b32.xlu0 %v3109_v11, %s2443_s3 }
 0x340   :  { %v1060_v43 = vsub.f32 %v3344_v56, %v1006_v42 }
 0x341   :  { %v1120_v25 = vmul.f32 1.442695, %v1059_v45 }
 0x342   :  { %v1122_v34 = vmul.f32 1.442695, %v1060_v43  ;;  %v1018_v43 = vpop.xlane.xlu2 %1017 }
 0x343   :  { %2318 = vpow2.f32 %v1120_v25 }
 0x346   :  { %v3451_v57 = vpop.xlane.xlu0 %975 }
 0x347   :  { %v1165_v20 = vpop.xlane.xlu1 %1164  ;;  %1670 = vrot.lane.b32.xlu0 %v2980_v7, %s2443_s3  ;;  %v1056_v7 = vsub.f32 %v3300_v47, %v994_v8  ;;  %v1062_v47 = vsub.f32 %v3209_v21, %v3388_v16 }
 0x348   :  { %2320 = vrcp.f32 %v1165_v20 }
 0x349   :  { %v3455_v54 = vpop.eup %2318  ;;  %2322 = vpow2.f32 %v1122_v34 }
 0x34a   :  { %3803 = vst [vmem:[#allocation2_spill] sm:$0xff] %v3455_v54  ;;  %v1217_v5 = vsel %vm925_vm2, %v3455_v54, 0.0 }
 0x34b   :  { %1218 = vadd.xlane.f32.xlu1 %v1217_v5 }
 0x34e   :  { %v1162_v11 = vpop.xlane.xlu0 %1161  ;;  %v2321_v46 = vpop.eup %2320 }
 0x34f   :  { %2324 = vrcp.f32 %v1162_v11  ;;  %1476 = vrot.lane.b32.xlu0 %v3129_v41, %s2443_s3  ;;  %v3461_v56 = vpop.eup %2322  ;;  %v1293_v45 = vmul.f32 %v2321_v46, %v3362_v63  ;;  %v1114_v11 = vmul.f32 1.442695, %v1056_v7 }
 0x350   :  { %v1220_v42 = vsel %vm925_vm2, %v3461_v56, 0.0 }
 0x351   :  { %v1329_v34 = vpack.c.bf16 %v1293_v45, %v1293_v45  ;;  %v1126_v45 = vmul.f32 1.442695, %v1062_v47 }
 0x353   :  { %1221 = vadd.xlane.f32.xlu1 %v1220_v42  ;;  %v1374_v54 = vunpack.c.l.b16 %v1329_v34  ;;  %v967_v42 = vpop.xlane.xlu2 %966 }
 0x355   :  { %v2325_v25 = vpop.eup %2324 }
 0x356   :  { %v1292_v20 = vmul.f32 %v2325_v25, %v3373_v40  ;;  %v1168_v5 = vpop.xlane.xlu0 %1167 }
 0x357   :  { %2326 = vrcp.f32 %v1168_v5  ;;  %1668 = vrot.lane.b32.xlu0 %v2992_v24, %s2443_s3  ;;  %v1046_v24 = vsub.f32 %v3287_v27, %v3410_v1  ;;  %v1057_v27 = vsub.f32 %v3262_v51, %v3421_v50  ;;  %v941_v50 = vsel %vm925_vm2, %v3029_v2, -inf }
 0x358   :  { %v1328_v41 = vpack.c.bf16 %v1292_v20, %v1292_v20  ;;  %2328 = vpow2.f32 %v1114_v11  ;;  %v1063_v11 = vsub.f32 %v3220_v60, %v3391_v29 }
 0x359   :  { %2330 = vpow2.f32 %v1126_v45  ;;  %v1094_v21 = vmul.f32 1.442695, %v1046_v24 }
 0x35a   :  { %v1373_v63 = vunpack.c.l.b16 %v1328_v41  ;;  %v1116_v41 = vmul.f32 1.442695, %v1057_v27 }
 0x35b   :  { %v3482_v20 = vpop.xlane.xlu2 %1023  ;;  %2332 = vpow2.f32 %v1094_v21 }
 0x35c   :  { %v1379_v8 = vpack.c.b16 %v1374_v54, %v1373_v63  ;;  %2334 = vpow2.f32 %v1116_v41 }
 0x35d   :  { %v2327_v46 = vpop.eup %2326 }
 0x35e   :  { %2065 = vmatmul.msk.bf16.vlgmr.msra.gmra.mxu3 %vm925_vm2, %v1379_v8  ;;  %v1294_v40 = vmul.f32 %v2327_v46, %v3377_v61  ;;  %v3474_v7 = vpop.eup %2328  ;;  %v1128_v8 = vmul.f32 1.442695, %v1063_v11  ;;  %v1064_v46 = vsub.f32 %v3298_v58, %v1018_v43 }
 0x35f   :  { %v1208_v25 = vsel %vm925_vm2, %v3474_v7, 0.0  ;;  %v3480_v54 = vpop.eup %2330 }
 0x360   :  { %v1330_v34 = vpack.c.bf16 %v1294_v40, %v1294_v40  ;;  %v1226_v61 = vsel %vm925_vm2, %v3480_v54, 0.0  ;;  %2336 = vpow2.f32 %v1128_v8  ;;  %v1130_v29 = vmul.f32 1.442695, %v1064_v46 }
 0x361   :  { %v3491_v1 = vpop.eup %2332  ;;  %v1034_v8 = vsub.f32 %v3070_v12, %v3386_v31  ;;  %v1065_v31 = vsub.f32 %v3309_v10, %v3435_v30 }
 0x362   :  { %v1375_v16 = vunpack.c.l.b16 %v1330_v34  ;;  %v1178_v47 = vsel %vm925_vm2, %v3491_v1, 0.0  ;;  %v3502_v45 = vpop.eup %2334 }
 0x363   :  { %v970_v63 = vpop.xlane.xlu2 %969  ;;  %v1211_v40 = vsel %vm925_vm2, %v3502_v45, 0.0 }
 0x364   :  { %v1380_v5 = vpack.c.b16 %v1375_v16, %v1375_v16 }
 0x365   :  { %1209 = vadd.xlane.f32.xlu2 %v1208_v25 }
 0x366   :  { %v3508_v24 = vpop.eup %2336 }
 0x367   :  { %v1229_v58 = vsel %vm925_vm2, %v3508_v24, 0.0 }
 0x368   :  { %v1198_v25 = vpop.xlane.xlu1 %1197 }
 0x36b   :  { %v3504_v60 = vpop.xlane.xlu2 %1029 }
 0x36c   :  { %1664 = vrot.lane.b32.xlu1 %v3046_v14, %s2443_s3  ;;  %v1058_v14 = vsub.f32 %v3328_v0, %v3441_v3  ;;  %v1047_v3 = vsub.f32 %v3311_v49, %v967_v42  ;;  %v1067_v49 = vsub.f32 %v3285_v32, %v3437_v22 }
 0x36d   :  { %1227 = vadd.xlane.f32.xlu2 %v1226_v61  ;;  %v1048_v61 = vsub.f32 %v3342_v55, %v970_v63  ;;  %v1031_v63 = vsel %vm925_vm2, %v3272_v9, -inf }
 0x36e   :  { %2066 = vmatmul.msk.bf16.gmra.mxu3 %vm925_vm2, %v1380_v5  ;;  %v1118_v51 = vmul.f32 1.442695, %v1058_v14  ;;  %v1096_v16 = vmul.f32 1.442695, %v1047_v3  ;;  %v1136_v41 = vmul.f32 1.442695, %v1067_v49 }
 0x36f   :  { %v1098_v42 = vmul.f32 1.442695, %v1048_v61  ;;  %v1070_v14 = vmul.f32 1.442695, %v1034_v8  ;;  %v1132_v61 = vmul.f32 1.442695, %v1065_v31 }
 0x370   :  { %2338 = vpow2.f32 %v1118_v51 }
 0x371   :  { %2340 = vpow2.f32 %v1130_v29 }
 0x372   :  { %2342 = vrcp.f32 %v1198_v25 }
 0x373   :  { %2344 = vpow2.f32 %v1096_v16 }
 0x375   :  { %1179 = vadd.xlane.f32.xlu2 %v1178_v47 }
 0x376   :  { %v3512_v0 = vpop.eup %2338 }
 0x377   :  { %v1214_v34 = vsel %vm925_vm2, %v3512_v0, 0.0  ;;  %v3519_v21 = vpop.eup %2340 }
 0x378   :  { %v1232_v5 = vsel %vm925_vm2, %v3519_v21, 0.0  ;;  %v2343_v11 = vpop.eup %2342 }
 0x379   :  { %v3526_v47 = vpop.eup %2344  ;;  %v1304_v55 = vmul.f32 %v2343_v11, %v3382_v19 }
 0x37a   :  { %v1181_v22 = vsel %vm925_vm2, %v3526_v47, 0.0 }
 0x37b   :  { %v1340_v46 = vpack.c.bf16 %v1304_v55, %v1304_v55 }
 0x37d   :  { %942 = vmax.xlane.f32.xlu2 %v941_v50 }
 0x381   :  { %1212 = vadd.xlane.f32.xlu0 %v1211_v40  ;;  %v1556_v40 = vunpack.c.l.b16 %v1340_v46 }
 0x385   :  { %1230 = vadd.xlane.f32.xlu2 %v1229_v58 }
 0x386   :  { %v3515_v43 = vpop.xlane.xlu2 %1170 }
 0x389   :  { %1215 = vadd.xlane.f32.xlu0 %v1214_v34 }
 0x38d   :  { %1233 = vadd.xlane.f32.xlu2 %v1232_v5 }
 0x38f   :  { %v1201_v27 = vpop.xlane.xlu2 %1200 }
 0x390   :  { %2346 = vrcp.f32 %v1201_v27 }
 0x391   :  { %2348 = vpow2.f32 %v1098_v42 }
 0x392   :  { %2350 = vpow2.f32 %v1136_v41 }
 0x395   :  { %1032 = vmax.xlane.f32.xlu2 %v1031_v63 }
 0x396   :  { %v2347_v32 = vpop.eup %2346  ;;  %1182 = vadd.xlane.f32.xlu1 %v1181_v22  ;;  %v1174_v22 = vpop.xlane.xlu1 %1173 }
 0x397   :  { %v1305_v51 = vmul.f32 %v2347_v32, %v3404_v37  ;;  %v1204_v50 = vpop.xlane.xlu2 %1203  ;;  %v3536_v29 = vpop.eup %2348 }
 0x398   :  { %2352 = vrcp.f32 %v1204_v50  ;;  %v3538_v19 = vpop.eup %2350  ;;  %v1184_v3 = vsel %vm925_vm2, %v3536_v29, 0.0 }
 0x399   :  { %v1341_v12 = vpack.c.bf16 %v1305_v51, %v1305_v51  ;;  %2354 = vpow2.f32 %v1070_v14  ;;  %v1241_v34 = vsel %vm925_vm2, %v3538_v19, 0.0 }
 0x39b   :  { %v1557_v58 = vunpack.c.l.b16 %v1341_v12 }
 0x39d   :  { %v1565_v25 = vpack.c.b16 %v1557_v58, %v1556_v40  ;;  %1185 = vadd.xlane.f32.xlu2 %v1184_v3  ;;  %1666 = vrot.lane.b32.xlu0 %v3022_v36, %s2443_s3  ;;  %v1049_v36 = vsub.f32 %v3330_v13, %v3443_v53  ;;  %s2445_s3 = smov 32  }
 0x39e   :  { %v1207_v37 = vpop.xlane.xlu0 %1206  ;;  %v2353_v16 = vpop.eup %2352  ;;  %1242 = vadd.xlane.f32.xlu1 %v1241_v34 }
 0x39f   :  { %2356 = vrcp.f32 %v1207_v37  ;;  %v1673_v5 = vpop.permute.xlu2 %1672  ;;  %2072 = vmatmul.msk.bf16.vlgmr.msra.gmra.mxu0 %vm925_vm2, %v1565_v25  ;;  %v3549_v10 = vpop.eup %2354  ;;  %v1306_v30 = vmul.f32 %v2353_v16, %v3415_v26  ;;  %v1100_v41 = vmul.f32 1.442695, %v1049_v36  ;;  %v1036_v26 = vsub.f32 %v3132_v44, %v3306_v52 }
 0x3a0   :  { %1705 = vmatpush.bf16.msrb.mxu0 %v1673_v5  ;;  %2221 = vmatpush.bf16.msra.mxu1 %v1673_v5  ;;  %2358 = vpow2.f32 %v1132_v61  ;;  %v1142_v49 = vsel %vm925_vm2, %v3549_v10, 0.0  ;;  %v1068_v44 = vsub.f32 %v3358_v38, %v3504_v60  ;;  %v1035_v60 = vsub.f32 %v3112_v59, %v3289_v17  ;;  %v1225_v59 = vpop.xlane.xlu1 %1224 }
 0x3a1   :  { %v1342_v11 = vpack.c.bf16 %v1306_v30, %v1306_v30  ;;  %2360 = vpow2.f32 %v1100_v41  ;;  %v1074_v14 = vmul.f32 1.442695, %v1036_v26  ;;  %v1066_v30 = vsub.f32 %v3326_v48, %v3482_v20 }
 0x3a2   :  { %2362 = vrcp.f32 %v1174_v22  ;;  %v1138_v12 = vmul.f32 1.442695, %v1068_v44  ;;  %v977_v17 = vsel %vm925_vm2, %v3364_v28, -inf }
 0x3a3   :  { %v1558_v63 = vunpack.c.l.b16 %v1342_v11  ;;  %2364 = vrcp.f32 %v3515_v43  ;;  %v1134_v36 = vmul.f32 1.442695, %v1066_v30 }
 0x3a4   :  { %2366 = vpow2.f32 %v1074_v14 }
 0x3a5   :  { %v2357_v42 = vpop.eup %2356  ;;  %1143 = vadd.xlane.f32.xlu2 %v1142_v49  ;;  %2368 = vpow2.f32 %v1138_v12 }
 0x3a6   :  { %v1307_v27 = vmul.f32 %v2357_v42, %v3425_v18  ;;  %v3557_v55 = vpop.eup %2358 }
 0x3a7   :  { %v1235_v13 = vsel %vm925_vm2, %v3557_v55, 0.0  ;;  %v3565_v18 = vpop.eup %2360 }
 0x3a8   :  { %v1343_v8 = vpack.c.bf16 %v1307_v27, %v1307_v27  ;;  %v2363_v52 = vpop.eup %2362  ;;  %v1187_v51 = vsel %vm925_vm2, %v3565_v18, 0.0  ;;  %v1050_v27 = vsub.f32 %v3360_v23, %v3451_v57  ;;  %v1177_v20 = vpop.xlane.xlu1 %1176 }
 0x3a9   :  { %v2365_v50 = vpop.eup %2364  ;;  %v1296_v31 = vmul.f32 %v2363_v52, %v3401_v33  ;;  %v1072_v33 = vmul.f32 1.442695, %v1035_v60 }
 0x3aa   :  { %v1559_v32 = vunpack.c.l.b16 %v1343_v8  ;;  %v3572_v40 = vpop.eup %2366  ;;  %v1295_v43 = vmul.f32 %v2365_v50, %v3395_v4  ;;  %v1102_v11 = vmul.f32 1.442695, %v1050_v27  ;;  %v1037_v8 = vsub.f32 %v3019_v15, %v3323_v35 }
 0x3ab   :  { %v1332_v3 = vpack.c.bf16 %v1296_v31, %v1296_v31  ;;  %v1148_v38 = vsel %vm925_vm2, %v3572_v40, 0.0  ;;  %v3579_v34 = vpop.eup %2368  ;;  %2370 = vpow2.f32 %v1072_v33 }
 0x3ac   :  { %v1566_v53 = vpack.c.b16 %v1559_v32, %v1558_v63  ;;  %v1331_v25 = vpack.c.bf16 %v1295_v43, %v1295_v43  ;;  %v1244_v5 = vsel %vm925_vm2, %v3579_v34, 0.0  ;;  %2372 = vpow2.f32 %v1134_v36 }
 0x3ad   :  { %1236 = vadd.xlane.f32.xlu2 %v1235_v13  ;;  %v1463_v37 = vunpack.c.l.b16 %v1332_v3  ;;  %2374 = vpow2.f32 %v1102_v11  ;;  %v1076_v26 = vmul.f32 1.442695, %v1037_v8 }
 0x3ae   :  { %v1462_v16 = vunpack.c.l.b16 %v1331_v25  ;;  %2376 = vrcp.f32 %v1225_v59 }
 0x3af   :  { %2073 = vmatmul.msk.bf16.gmra.mxu0 %vm925_vm2, %v1566_v53  ;;  %2378 = vpow2.f32 %v1076_v26 }
 0x3b0   :  { %v1471_v4 = vpack.c.b16 %v1463_v37, %v1462_v16  ;;  %v940_v22 = vpop.xlane.xlu1 %939 }
 0x3b1   :  { %v1479_v46 = vpop.permute.xlu0 %1478  ;;  %v3588_v42 = vpop.eup %2370  ;;  %v1038_v57 = vsub.f32 %v3433_v39, %v940_v22 }
 0x3b2   :  { %1520 = vmatpush.bf16.msrb.mxu3 %v1479_v46  ;;  %v1145_v48 = vsel %vm925_vm2, %v3588_v42, 0.0  ;;  %v3594_v41 = vpop.eup %2372 }
 0x3b3   :  { %v1238_v63 = vsel %vm925_vm2, %v3594_v41, 0.0  ;;  %v3600_v23 = vpop.eup %2374  ;;  %v1078_v35 = vmul.f32 1.442695, %v1038_v57 }
 0x3b4   :  { %v1190_v13 = vsel %vm925_vm2, %v3600_v23, 0.0  ;;  %v2377_v15 = vpop.eup %2376 }
 0x3b5   :  { %1188 = vadd.xlane.f32.xlu2 %v1187_v51  ;;  %v3607_v46 = vpop.eup %2378  ;;  %v1313_v44 = vmul.f32 %v2377_v15, %v3412_v62 }
 0x3b6   :  { %v1151_v52 = vsel %vm925_vm2, %v3607_v46, 0.0 }
 0x3b7   :  { %v1349_v51 = vpack.c.bf16 %v1313_v44, %v1313_v44 }
 0x3b9   :  { %v1671_v58 = vpop.permute.xlu0 %1670 }
 0x3ba   :  { %1706 = vmatpush.bf16.msrb.mxu0 %v1671_v58  ;;  %2222 = vmatpush.bf16.msra.mxu1 %v1671_v58 }
 0x3bd   :  { %1149 = vadd.xlane.f32.xlu2 %v1148_v38  ;;  %v3617_v38 = vunpack.c.l.b16 %v1349_v51 }
 0x3be   :  { %v1219_v33 = vpop.xlane.xlu1 %1218 }
 0x3c1   :  { %v1477_v61 = vpop.permute.xlu0 %1476 }
 0x3c2   :  { %1521 = vmatpush.bf16.msrb.mxu3 %v1477_v61 }
 0x3c5   :  { %1245 = vadd.xlane.f32.xlu2 %v1244_v5  ;;  %2067 = vmatmul.msk.bf16.vlgmr.msrb.gmra.mxu3 %vm925_vm2, %v1471_v4 }
 0x3c6   :  { %v1222_v8 = vpop.xlane.xlu1 %1221 }
 0x3c7   :  { %978 = vmax.xlane.f32.xlu0 %v977_v17 }
 0x3c9   :  { %v1669_v49 = vpop.permute.xlu0 %1668 }
 0x3ca   :  { %1707 = vmatpush.bf16.msrb.mxu0 %v1669_v49  ;;  %2223 = vmatpush.bf16.msra.mxu1 %v1669_v49 }
 0x3cf   :  { %1146 = vadd.xlane.f32.xlu0 %v1145_v48 }
 0x3d7   :  { %1239 = vadd.xlane.f32.xlu0 %v1238_v63 }
 0x3d8   :  { %v1210_v32 = vpop.xlane.xlu2 %1209 }
 0x3df   :  { %1191 = vadd.xlane.f32.xlu0 %v1190_v13 }
 0x3e0   :  { %v1228_v53 = vpop.xlane.xlu2 %1227 }
 0x3e1   :  { %2380 = vrcp.f32 %v1228_v53  ;;  %v3605_v14 = vpop.f32.mrf.mxu3 }
 0x3e2   :  { %2382 = vrcp.f32 %v1177_v20 }
 0x3e3   :  { %2384 = vpow2.f32 %v1078_v35 }
 0x3e7   :  { %v2381_v39 = vpop.eup %2380  ;;  %1152 = vadd.xlane.f32.xlu0 %v1151_v52 }
 0x3e8   :  { %v1314_v50 = vmul.f32 %v2381_v39, %v3480_v54  ;;  %v1180_v12 = vpop.xlane.xlu2 %1179  ;;  %v2383_v31 = vpop.eup %2382 }
 0x3e9   :  { %2386 = vrcp.f32 %v1180_v12  ;;  %v3613_v43 = vpop.f32.mrf.mxu3  ;;  %v3615_v3 = vpop.eup %2384  ;;  %v1297_v60 = vmul.f32 %v2383_v31, %v3423_v6  ;;  %v3804_v31 = vld [vmem:[#allocation2_spill] sm:$0xff] }
 0x3ea   :  { %v1350_v58 = vpack.c.bf16 %v1314_v50, %v1314_v50  ;;  %v1154_v54 = vsel %vm925_vm2, %v3615_v3, 0.0  ;;  %2388 = vrcp.f32 %v1210_v32 }
 0x3eb   :  { %v1333_v4 = vpack.c.bf16 %v1297_v60, %v1297_v60 }
 0x3ec   :  { %v3619_v62 = vunpack.c.l.b16 %v1350_v58 }
 0x3ed   :  { %v1464_v36 = vunpack.c.l.b16 %v1333_v4 }
 0x3ee   :  { %v1659_v25 = vpack.c.b16 %v3619_v62, %v3617_v38 }
 0x3ef   :  { %v2387_v37 = vpop.eup %2386  ;;  %1155 = vadd.xlane.f32.xlu0 %v1154_v54 }
 0x3f0   :  { %v943_v16 = vpop.xlane.xlu2 %942  ;;  %v1298_v61 = vmul.f32 %v2387_v37, %v3491_v1  ;;  %v2389_v27 = vpop.eup %2388 }
 0x3f1   :  { %v1039_v5 = vsub.f32 %v3029_v2, %v943_v16  ;;  %v3628_v30 = vpop.f32.mrf.mxu3  ;;  %v1308_v1 = vmul.f32 %v2389_v27, %v3474_v7  ;;  %v1665_v7 = vpop.permute.xlu1 %1664 }
 0x3f2   :  { %v1334_v59 = vpack.c.bf16 %v1298_v61, %v1298_v61 }
 0x3f3   :  { %v1080_v6 = vmul.f32 1.442695, %v1039_v5  ;;  %v1344_v57 = vpack.c.bf16 %v1308_v1, %v1308_v1 }
 0x3f4   :  { %v1213_v17 = vpop.xlane.xlu0 %1212  ;;  %v1465_v49 = vunpack.c.l.b16 %v1334_v59 }
 0x3f5   :  { %2390 = vpow2.f32 %v1080_v6  ;;  %v1560_v15 = vunpack.c.l.b16 %v1344_v57 }
 0x3f6   :  { %2392 = vrcp.f32 %v1213_v17  ;;  %v1472_v48 = vpack.c.b16 %v1465_v49, %v1464_v36 }
 0x3f8   :  { %v1231_v20 = vpop.xlane.xlu2 %1230  ;;  %2068 = vmatmul.msk.bf16.gmra.mxu3 %vm925_vm2, %v1472_v48 }
 0x3f9   :  { %v1451_v11 = vpop.f32.mrf.mxu3 }
 0x3fb   :  { %v3632_v63 = vpop.eup %2390 }
 0x3fc   :  { %v2393_v2 = vpop.eup %2392  ;;  %v1216_v32 = vpop.xlane.xlu0 %1215  ;;  %v1157_v26 = vsel %vm925_vm2, %v3632_v63, 0.0 }
 0x3fd   :  { %1158 = vadd.xlane.f32.xlu1 %v1157_v26  ;;  %v1309_v22 = vmul.f32 %v2393_v2, %v3502_v45  ;;  %2394 = vrcp.f32 %v1216_v32 }
 0x3fe   :  { %2396 = vrcp.f32 %v1219_v33 }
 0x3ff   :  { %v1345_v13 = vpack.c.bf16 %v1309_v22, %v1309_v22 }
 0x400   :  { %v1234_v53 = vpop.xlane.xlu2 %1233 }
 0x401   :  { %2398 = vrcp.f32 %v1234_v53  ;;  %v1561_v35 = vunpack.c.l.b16 %v1345_v13 }
 0x402   :  { %2400 = vrcp.f32 %v1231_v20 }
 0x403   :  { %v1567_v44 = vpack.c.b16 %v1561_v35, %v1560_v15  ;;  %v2395_v52 = vpop.eup %2394 }
 0x404   :  { %v2397_v39 = vpop.eup %2396  ;;  %v1310_v50 = vmul.f32 %v2395_v52, %v3512_v0 }
 0x405   :  { %2074 = vmatmul.msk.bf16.gmra.mxu0 %vm925_vm2, %v1567_v44  ;;  %v1311_v58 = vmul.f32 %v2397_v39, %v3804_v31 }
 0x406   :  { %v1346_v16 = vpack.c.bf16 %v1310_v50, %v1310_v50 }
 0x407   :  { %v2399_v51 = vpop.eup %2398  ;;  %v1347_v4 = vpack.c.bf16 %v1311_v58, %v1311_v58 }
 0x408   :  { %v2401_v12 = vpop.eup %2400  ;;  %v1033_v45 = vpop.xlane.xlu2 %1032  ;;  %v1316_v60 = vmul.f32 %v2399_v51, %v3519_v21  ;;  %v1562_v0 = vunpack.c.l.b16 %v1346_v16 }
 0x409   :  { %v1069_v54 = vsub.f32 %v3272_v9, %v1033_v45  ;;  %v1183_v37 = vpop.xlane.xlu1 %1182  ;;  %v1315_v33 = vmul.f32 %v2401_v12, %v3508_v24  ;;  %v1563_v21 = vunpack.c.l.b16 %v1347_v4 }
 0x40a   :  { %2402 = vrcp.f32 %v1183_v37  ;;  %v1352_v5 = vpack.c.bf16 %v1316_v60, %v1316_v60 }
 0x40b   :  { %v1140_v61 = vmul.f32 1.442695, %v1069_v54  ;;  %v1351_v59 = vpack.c.bf16 %v1315_v33, %v1315_v33  ;;  %v1568_v27 = vpack.c.b16 %v1563_v21, %v1562_v0 }
 0x40c   :  { %v1653_v49 = vunpack.c.l.b16 %v1352_v5 }
 0x40d   :  { %2404 = vpow2.f32 %v1140_v61  ;;  %v1652_v24 = vunpack.c.l.b16 %v1351_v59 }
 0x40e   :  { %2406 = vrcp.f32 %v1222_v8 }
 0x40f   :  { %v1667_v6 = vpop.permute.xlu0 %1666  ;;  %v1660_v1 = vpack.c.b16 %v1653_v49, %v1652_v24 }
 0x410   :  { %v1186_v17 = vpop.xlane.xlu2 %1185  ;;  %1708 = vmatpush.bf16.msrb.mxu0 %v1667_v6  ;;  %2224 = vmatpush.bf16.msra.mxu1 %v1667_v6  ;;  %v2403_v36 = vpop.eup %2402 }
 0x411   :  { %2408 = vrcp.f32 %v1186_v17  ;;  %v1299_v11 = vmul.f32 %v2403_v36, %v3526_v47  ;;  %v1243_v36 = vpop.xlane.xlu1 %1242 }
 0x413   :  { %v3643_v9 = vpop.eup %2404  ;;  %v1335_v26 = vpack.c.bf16 %v1299_v11, %v1299_v11 }
 0x414   :  { %v2407_v48 = vpop.eup %2406  ;;  %v1247_v20 = vsel %vm925_vm2, %v3643_v9, 0.0  ;;  %1709 = vmatpush.bf16.msrb.mxu0 %v1665_v7  ;;  %2225 = vmatpush.bf16.msra.mxu1 %v1665_v7 }
 0x415   :  { %1248 = vadd.xlane.f32.xlu0 %v1247_v20  ;;  %2075 = vmatmul.msk.bf16.gmra.mxu0 %vm925_vm2, %v1568_v27  ;;  %v1312_v2 = vmul.f32 %v2407_v48, %v3461_v56  ;;  %v1466_v13 = vunpack.c.l.b16 %v1335_v26 }
 0x417   :  { %v2409_v8 = vpop.eup %2408  ;;  %2078 = vmatmul.msk.bf16.vlgmr.msra.gmra.mxu1 %vm925_vm2, %v1660_v1  ;;  %v1348_v57 = vpack.c.bf16 %v1312_v2, %v1312_v2 }
 0x418   :  { %v1300_v32 = vmul.f32 %v2409_v8, %v3536_v29  ;;  %v1144_v7 = vpop.xlane.xlu2 %1143 }
 0x419   :  { %v1564_v35 = vunpack.c.l.b16 %v1348_v57  ;;  %2410 = vrcp.f32 %v1144_v7 }
 0x41a   :  { %v1336_v22 = vpack.c.bf16 %v1300_v32, %v1300_v32 }
 0x41b   :  { %v1569_v47 = vpack.c.b16 %v1564_v35, %v1564_v35 }
 0x41c   :  { %v1467_v53 = vunpack.c.l.b16 %v1336_v22  ;;  %v3658_v56 = vpop.f32.mrf.mxu0 }
 0x41e   :  { %v1473_v15 = vpack.c.b16 %v1467_v53, %v1466_v13 }
 0x41f   :  { %v2411_v45 = vpop.eup %2410 }
 0x420   :  { %2069 = vmatmul.msk.bf16.gmra.mxu3 %vm925_vm2, %v1473_v15  ;;  %v1237_v44 = vpop.xlane.xlu2 %1236  ;;  %v1286_v62 = vmul.f32 %v2411_v45, %v3549_v10 }
 0x422   :  { %v1322_v60 = vpack.c.bf16 %v1286_v62, %v1286_v62 }
 0x424   :  { %v3661_v50 = vpop.f32.mrf.mxu0  ;;  %v1367_v4 = vunpack.c.l.b16 %v1322_v60 }
 0x425   :  { %2076 = vmatmul.msk.bf16.gmra.mxu0 %vm925_vm2, %v1569_v47 }
 0x428   :  { %v1189_v52 = vpop.xlane.xlu2 %1188 }
 0x42c   :  { %v1622_v16 = vpop.f32.mrf.mxu0 }
 0x430   :  { %v1150_v38 = vpop.xlane.xlu2 %1149 }
 0x434   :  { %v1624_v20 = vpop.f32.mrf.mxu0 }
 0x435   :  { %2077 = vmatmul.msk.bf16.vlgmr.msrb.gmra.mxu0 %vm925_vm2, %v1659_v25 }
 0x438   :  { %v1246_v10 = vpop.xlane.xlu2 %1245 }
 0x43a   :  { %v979_v29 = vpop.xlane.xlu0 %978 }
 0x43b   :  { %v1051_v39 = vsub.f32 %v3364_v28, %v979_v29 }
 0x43d   :  { %v1104_v51 = vmul.f32 1.442695, %v1051_v39 }
 0x43f   :  { %2412 = vpow2.f32 %v1104_v51 }
 0x442   :  { %v1147_v12 = vpop.xlane.xlu0 %1146 }
 0x443   :  { %2414 = vrcp.f32 %v1147_v12 }
 0x444   :  { %2416 = vrcp.f32 %v1237_v44 }
 0x445   :  { %v3663_v31 = vpop.eup %2412 }
 0x446   :  { %v1193_v25 = vsel %vm925_vm2, %v3663_v31, 0.0 }
 0x447   :  { %1194 = vadd.xlane.f32.xlu2 %v1193_v25 }
 0x448   :  { %v1523_v58 = vpop.f32.mrf.mxu3 }
 0x449   :  { %v2415_v28 = vpop.eup %2414 }
 0x44a   :  { %v1287_v54 = vmul.f32 %v2415_v28, %v3588_v42  ;;  %v1240_v37 = vpop.xlane.xlu0 %1239  ;;  %v2417_v33 = vpop.eup %2416 }
 0x44b   :  { %2418 = vrcp.f32 %v1240_v37  ;;  %v1317_v5 = vmul.f32 %v2417_v33, %v3557_v55 }
 0x44c   :  { %v1323_v61 = vpack.c.bf16 %v1287_v54, %v1287_v54  ;;  %2420 = vrcp.f32 %v1189_v52 }
 0x44d   :  { %v1353_v49 = vpack.c.bf16 %v1317_v5, %v1317_v5  ;;  %2422 = vrcp.f32 %v1246_v10 }
 0x44e   :  { %v1368_v59 = vunpack.c.l.b16 %v1323_v61 }
 0x44f   :  { %v1654_v48 = vunpack.c.l.b16 %v1353_v49 }
 0x450   :  { %v1525_v0 = vpop.f32.mrf.mxu3  ;;  %v1376_v6 = vpack.c.b16 %v1368_v59, %v1367_v4 }
 0x451   :  { %v2419_v17 = vpop.eup %2418  ;;  %v2233_v21 = vpack.i.bf16 %v1525_v0, %v1523_v58 }
 0x452   :  { %v1318_v42 = vmul.f32 %v2419_v17, %v3594_v41  ;;  %2062 = vmatmul.msk.bf16.vlgmr.msrb.gmra.mxu2 %vm925_vm2, %v1376_v6  ;;  %v1192_v24 = vpop.xlane.xlu0 %1191  ;;  %v2421_v27 = vpop.eup %2420  ;;  %v2253_v41 = vpack.i.bf16 %v1624_v20, %v1622_v16 }
 0x453   :  { %2424 = vrcp.f32 %v1192_v24  ;;  %2234 = vrot.lane.b32.xlu1 %v2233_v21, %s2444_s2  ;;  %v1301_v1 = vmul.f32 %v2421_v27, %v3565_v18  ;;  %v2423_v8 = vpop.eup %2422  ;;  %v2238_v18 = vpack.i.bf16 %v3661_v50, %v3658_v56 }
 0x454   :  { %2426 = vrcp.f32 %v1243_v36  ;;  %v1354_v55 = vpack.c.bf16 %v1318_v42, %v1318_v42  ;;  %v1320_v15 = vmul.f32 %v2423_v8, %v3579_v34 }
 0x455   :  { %2428 = vrcp.f32 %v1150_v38  ;;  %v1337_v13 = vpack.c.bf16 %v1301_v1, %v1301_v1 }
 0x456   :  { %v1655_v11 = vunpack.c.l.b16 %v1354_v55 }
 0x457   :  { %v1468_v7 = vunpack.c.l.b16 %v1337_v13 }
 0x458   :  { %v1661_v2 = vpack.c.b16 %v1655_v11, %v1654_v48 }
 0x459   :  { %v2425_v32 = vpop.eup %2424 }
 0x45a   :  { %v2427_v26 = vpop.eup %2426  ;;  %v1153_v22 = vpop.xlane.xlu0 %1152  ;;  %2079 = vmatmul.msk.bf16.gmra.mxu1 %vm925_vm2, %v1661_v2  ;;  %v1302_v57 = vmul.f32 %v2425_v32, %v3600_v23  ;;  %v1356_v23 = vpack.c.bf16 %v1320_v15, %v1320_v15 }
 0x45b   :  { %v2429_v53 = vpop.eup %2428  ;;  %2430 = vrcp.f32 %v1153_v22  ;;  %2254 = vrot.lane.b32.xlu1 %v2253_v41, %s2445_s3  ;;  %v1319_v47 = vmul.f32 %v2427_v26, %v3538_v19 }
 0x45c   :  { %v1338_v35 = vpack.c.bf16 %v1302_v57, %v1302_v57  ;;  %v1288_v29 = vmul.f32 %v2429_v53, %v3572_v40  ;;  %v1657_v45 = vunpack.c.l.b16 %v1356_v23 }
 0x45d   :  { %v1355_v51 = vpack.c.bf16 %v1319_v47, %v1319_v47 }
 0x45e   :  { %v1469_v44 = vunpack.c.l.b16 %v1338_v35  ;;  %v1324_v12 = vpack.c.bf16 %v1288_v29, %v1288_v29 }
 0x45f   :  { %2239 = vrot.lane.b32.xlu2 %v2238_v18, %s2445_s3  ;;  %v1656_v56 = vunpack.c.l.b16 %v1355_v51 }
 0x460   :  { %v1474_v52 = vpack.c.b16 %v1469_v44, %v1468_v7  ;;  %v1369_v50 = vunpack.c.l.b16 %v1324_v12  ;;  %v2119_v12 = vld [vmem:[%s3799_s7 + $0x10] sm:$0xff] }
 0x461   :  { %v2431_v39 = vpop.eup %2430  ;;  %v1662_v58 = vpack.c.b16 %v1657_v45, %v1656_v56  ;;  %v2118_v45 = vld [vmem:[%s3799_s7 + $0x8] sm:$0xff] }
 0x462   :  { %2070 = vmatmul.msk.bf16.gmra.mxu3 %vm925_vm2, %v1474_v52  ;;  %v1289_v34 = vmul.f32 %v2431_v39, %v3607_v46  ;;  %v1156_v62 = vpop.xlane.xlu0 %1155 }
 0x463   :  { %2432 = vrcp.f32 %v1156_v62 }
 0x464   :  { %v1325_v38 = vpack.c.bf16 %v1289_v34, %v1289_v34 }
 0x466   :  { %v1370_v19 = vunpack.c.l.b16 %v1325_v38  ;;  %v2117_v38 = vld [vmem:[%s3799_s7] sm:$0xff] }
 0x468   :  { %v1377_v25 = vpack.c.b16 %v1370_v19, %v1369_v50 }
 0x469   :  { %v2433_v28 = vpop.eup %2432 }
 0x46a   :  { %2063 = vmatmul.msk.bf16.gmra.mxu2 %vm925_vm2, %v1377_v25  ;;  %2080 = vmatmul.msk.bf16.gmra.mxu1 %vm925_vm2, %v1662_v58  ;;  %v1290_v60 = vmul.f32 %v2433_v28, %v3615_v3 }
 0x46c   :  { %v1326_v37 = vpack.c.bf16 %v1290_v60, %v1290_v60 }
 0x46e   :  { %v1371_v61 = vunpack.c.l.b16 %v1326_v37 }
 0x470   :  { %v1159_v40 = vpop.xlane.xlu1 %1158 }
 0x471   :  { %2434 = vrcp.f32 %v1159_v40 }
 0x477   :  { %v2435_v46 = vpop.eup %2434 }
 0x478   :  { %v1291_v54 = vmul.f32 %v2435_v46, %v3632_v63 }
 0x47a   :  { %v1327_v33 = vpack.c.bf16 %v1291_v54, %v1291_v54 }
 0x47b   :  { %v1528_v16 = vpop.f32.mrf.mxu3 }
 0x47c   :  { %v1372_v4 = vunpack.c.l.b16 %v1327_v33 }
 0x47e   :  { %v1378_v5 = vpack.c.b16 %v1372_v4, %v1371_v61 }
 0x480   :  { %2064 = vmatmul.msk.bf16.gmra.mxu2 %vm925_vm2, %v1378_v5 }
 0x482   :  { %v1627_v59 = vpop.f32.mrf.mxu0 }
 0x483   :  { %v1530_v10 = vpop.f32.mrf.mxu3 }
 0x484   :  { %v2248_v0 = vpack.i.bf16 %v1530_v10, %v1528_v16 }
 0x486   :  { %2249 = vrot.lane.b32.xlu2 %v2248_v0, %s2444_s2 }
 0x488   :  { %v1249_v6 = vpop.xlane.xlu0 %1248 }
 0x489   :  { %2436 = vrcp.f32 %v1249_v6 }
 0x48a   :  { %v1629_v17 = vpop.f32.mrf.mxu0 }
 0x48b   :  { %v2268_v3 = vpack.i.bf16 %v1629_v17, %v1627_v59 }
 0x48d   :  { %2269 = vrot.lane.b32.xlu1 %v2268_v3, %s2445_s3 }
 0x48f   :  { %v2437_v63 = vpop.eup %2436 }
 0x490   :  { %v1321_v36 = vmul.f32 %v2437_v63, %v3643_v9 }
 0x492   :  { %v1357_v21 = vpack.c.bf16 %v1321_v36, %v1321_v36  ;;  %v1632_v49 = vpop.f32.mrf.mxu0 }
 0x494   :  { %v1658_v42 = vunpack.c.l.b16 %v1357_v21  ;;  %v1716_v2 = vpop.f32.mrf.mxu1 }
 0x496   :  { %v1663_v24 = vpack.c.b16 %v1658_v42, %v1658_v42 }
 0x498   :  { %2081 = vmatmul.msk.bf16.gmra.mxu1 %vm925_vm2, %v1663_v24 }
 0x49a   :  { %v1634_v27 = vpop.f32.mrf.mxu0 }
 0x49b   :  { %v2283_v55 = vpack.i.bf16 %v1634_v27, %v1632_v49 }
 0x49c   :  { %v1718_v22 = vpop.f32.mrf.mxu1 }
 0x49d   :  { %2284 = vrot.lane.b32.xlu1 %v2283_v55, %s2445_s3  ;;  %v2258_v53 = vpack.i.bf16 %v1718_v22, %v1716_v2 }
 0x4a2   :  { %v1637_v48 = vpop.f32.mrf.mxu0 }
 0x4a3   :  { %v1533_v20 = vpop.f32.mrf.mxu3 }
 0x4a5   :  { %1796 = vrot.lane.b32.xlu1 %v1637_v48, %s2445_s3 }
 0x4aa   :  { %v1639_v11 = vpop.f32.mrf.mxu0 }
 0x4ab   :  { %v1535_v1 = vpop.f32.mrf.mxu3 }
 0x4ac   :  { %v2263_v8 = vpack.i.bf16 %v1535_v1, %v1533_v20 }
 0x4ae   :  { %2264 = vrot.lane.b32.xlu2 %v2263_v8, %s2444_s2 }
 0x4b2   :  { %v1711_v9 = vpop.f32.mrf.mxu0 }
 0x4ba   :  { %v1713_v32 = vpop.f32.mrf.mxu0  ;;  %v1195_v41 = vpop.xlane.xlu2 %1194 }
 0x4bb   :  { %v2243_v26 = vpack.i.bf16 %v1713_v32, %v1711_v9  ;;  %2438 = vrcp.f32 %v1195_v41 }
 0x4bd   :  { %2244 = vrot.lane.b32.xlu0 %v2243_v26, %s2446_s30 }
 0x4c1   :  { %v2439_v57 = vpop.eup %2438 }
 0x4c2   :  { %v1303_v13 = vmul.f32 %v2439_v57, %v3663_v31  ;;  %v2120_v31 = vld [vmem:[%s3799_s7 + $0x18] sm:$0xff]  ;;  %v2240_v58 = vpop.permute.xlu2 %2239 }
 0x4c3   :  { %1932 = vmatpush.bf16.msra.mxu2 %v2120_v31  ;;  %v2242_v54 = vunpack.i.h.bf16 %v2240_v58  ;;  %v2241_v37 = vunpack.i.l.bf16 %v2240_v58 }
 0x4c4   :  { %v1339_v15 = vpack.c.bf16 %v1303_v13, %v1303_v13 }
 0x4c5   :  { %2259 = vrot.lane.b32.xlu0 %v2258_v53, %s2446_s30  ;;  %v2235_v25 = vpop.permute.xlu1 %2234 }
 0x4c6   :  { %v1470_v35 = vunpack.c.l.b16 %v1339_v15  ;;  %v2237_v40 = vunpack.i.h.bf16 %v2235_v25  ;;  %v2236_v28 = vunpack.i.l.bf16 %v2235_v25 }
 0x4c7   :  { %1933 = vmatpush.bf16.msra.mxu2 %v2119_v12 }
 0x4c8   :  { %v1475_v18 = vpack.c.b16 %v1470_v35, %v1470_v35 }
 0x4ca   :  { %2071 = vmatmul.msk.bf16.gmra.mxu3 %vm925_vm2, %v1475_v18 }
 0x4cb   :  { %1934 = vmatpush.bf16.msra.mxu2 %v2118_v45 }
 0x4cd   :  { %v2255_v36 = vpop.permute.xlu1 %2254 }
 0x4ce   :  { %v2257_v48 = vunpack.i.h.bf16 %v2255_v36  ;;  %v2256_v20 = vunpack.i.l.bf16 %v2255_v36 }
 0x4cf   :  { %1935 = vmatpush.bf16.msra.mxu2 %v2117_v38 }
 0x4d5   :  { %v1429_v50 = vpop.f32.mrf.mxu2 }
 0x4d6   :  { %v1843_v60 = vsel %vm546_vm1, %v1429_v50, %v2236_v28 }
 0x4d7   :  { %v1721_v47 = vpop.f32.mrf.mxu1  ;;  %v1852_v5 = vsel %vm85_vm0, %v1843_v60, %v2241_v37 }
 0x4dd   :  { %v1431_v62 = vpop.f32.mrf.mxu2 }
 0x4de   :  { %v1844_v46 = vsel %vm546_vm1, %v1431_v62, %v2237_v40 }
 0x4df   :  { %v1723_v7 = vpop.f32.mrf.mxu1  ;;  %v1853_v59 = vsel %vm85_vm0, %v1844_v46, %v2242_v54 }
 0x4e0   :  { %v2273_v44 = vpack.i.bf16 %v1723_v7, %v1721_v47  ;;  %v2250_v17 = vpop.permute.xlu2 %2249 }
 0x4e1   :  { %v2252_v21 = vunpack.i.h.bf16 %v2250_v17  ;;  %v2251_v49 = vunpack.i.l.bf16 %v2250_v17 }
 0x4e2   :  { %2274 = vrot.lane.b32.xlu0 %v2273_v44, %s2446_s30 }
 0x4e5   :  { %v1538_v29 = vpop.f32.mrf.mxu3 }
 0x4e7   :  { %v1726_v23 = vpop.f32.mrf.mxu1 }
 0x4ed   :  { %v1540_v52 = vpop.f32.mrf.mxu3  ;;  %v1434_v33 = vpop.f32.mrf.mxu2 }
 0x4ee   :  { %v2278_v39 = vpack.i.bf16 %v1540_v52, %v1538_v29  ;;  %v1845_v42 = vsel %vm546_vm1, %v1434_v33, %v2251_v49 }
 0x4ef   :  { %v1728_v51 = vpop.f32.mrf.mxu1  ;;  %v1854_v11 = vsel %vm85_vm0, %v1845_v42, %v2256_v20 }
 0x4f0   :  { %v2288_v34 = vpack.i.bf16 %v1728_v51, %v1726_v23  ;;  %2279 = vrot.lane.b32.xlu2 %v2278_v39, %s2444_s2 }
 0x4f2   :  { %2289 = vrot.lane.b32.xlu0 %v2288_v34, %s2446_s30 }
 0x4f5   :  { %v1436_v3 = vpop.f32.mrf.mxu2 }
 0x4f6   :  { %v1846_v24 = vsel %vm546_vm1, %v1436_v3, %v2252_v21 }
 0x4f7   :  { %v1855_v1 = vsel %vm85_vm0, %v1846_v24, %v2257_v48 }
 0x4ff   :  { %v2270_v53 = vpop.permute.xlu1 %2269 }
 0x500   :  { %v2272_v18 = vunpack.i.h.bf16 %v2270_v53  ;;  %v2271_v47 = vunpack.i.l.bf16 %v2270_v53 }
 0x503   :  { %v1439_v32 = vpop.f32.mrf.mxu2 }
 0x508   :  { %v2265_v41 = vpop.permute.xlu2 %2264 }
 0x509   :  { %v2267_v22 = vunpack.i.h.bf16 %v2265_v41  ;;  %v2266_v57 = vunpack.i.l.bf16 %v2265_v41 }
 0x50b   :  { %v1441_v13 = vpop.f32.mrf.mxu2  ;;  %v1847_v15 = vsel %vm546_vm1, %v1439_v32, %v2266_v57 }
 0x50c   :  { %v1848_v35 = vsel %vm546_vm1, %v1441_v13, %v2267_v22  ;;  %v1856_v39 = vsel %vm85_vm0, %v1847_v15, %v2271_v47 }
 0x50d   :  { %v1857_v52 = vsel %vm85_vm0, %v1848_v35, %v2272_v18 }
 0x515   :  { %v1731_v56 = vpop.f32.mrf.mxu1 }
 0x516   :  { %1832 = vrot.lane.b32.xlu0 %v1731_v56, %s2446_s30  ;;  %v2285_v56 = vpop.permute.xlu1 %2284 }
 0x517   :  { %v2287_v62 = vunpack.i.h.bf16 %v2285_v56  ;;  %v2286_v25 = vunpack.i.l.bf16 %v2285_v56 }
 0x51d   :  { %v1733_v19 = vpop.f32.mrf.mxu1 }
 0x52f   :  { %v2245_v16 = vpop.permute.xlu0 %2244 }
 0x530   :  { %v2247_v61 = vunpack.i.h.bf16 %v2245_v16  ;;  %v2246_v4 = vunpack.i.l.bf16 %v2245_v16  ;;  %v1797_v16 = vpop.permute.xlu1 %1796 }
 0x532   :  { %v1862_v10 = vsel %vm1861_vm4, %v1852_v5, %v2246_v4  ;;  %v1863_v0 = vsel %vm1861_vm4, %v1853_v59, %v2247_v61 }
 0x533   :  { %v1871_v6 = vpack.c.bf16 %v1863_v0, %v1862_v10  ;;  %v2295_v10 = vld [vmem:[%s3800_s8] ss:$0 sm:$0xff] }
 0x535   :  { %2098 = vmatmul.msk.bf16.vlgmr.msra.gmra.mxu2 %vm1912_vm5, %v1871_v6 }
 0x537   :  { %v2260_v63 = vpop.permute.xlu0 %2259 }
 0x538   :  { %v2262_v27 = vunpack.i.h.bf16 %v2260_v63  ;;  %v2261_v55 = vunpack.i.l.bf16 %v2260_v63 }
 0x53a   :  { %v1864_v8 = vsel %vm1861_vm4, %v1854_v11, %v2261_v55  ;;  %v1865_v9 = vsel %vm1861_vm4, %v1855_v1, %v2262_v27 }
 0x53b   :  { %v1872_v2 = vpack.c.bf16 %v1865_v9, %v1864_v8 }
 0x545   :  { %2099 = vmatmul.msk.bf16.gmra.mxu2 %vm1912_vm5, %v1872_v2 }
 0x54a   :  { %v2280_v12 = vpop.permute.xlu2 %2279 }
 0x54b   :  { %v2282_v45 = vunpack.i.h.bf16 %v2280_v12  ;;  %v2281_v38 = vunpack.i.l.bf16 %v2280_v12 }
 0x54d   :  { %v1543_v26 = vpop.f32.mrf.mxu3  ;;  %v1850_v50 = vsel %vm546_vm1, %v3613_v43, %v2282_v45  ;;  %v1849_v19 = vsel %vm546_vm1, %v3605_v14, %v2281_v38 }
 0x54e   :  { %1760 = vrot.lane.b32.xlu2 %v1543_v26, %s2444_s2  ;;  %v1858_v60 = vsel %vm85_vm0, %v1849_v19, %v2286_v25  ;;  %v1859_v46 = vsel %vm85_vm0, %v1850_v50, %v2287_v62 }
 0x554   :  { %v2275_v7 = vpop.permute.xlu0 %2274 }
 0x555   :  { %v2277_v44 = vunpack.i.h.bf16 %v2275_v7  ;;  %v2276_v29 = vunpack.i.l.bf16 %v2275_v7  ;;  %v1545_v23 = vpop.f32.mrf.mxu3 }
 0x557   :  { %v1866_v51 = vsel %vm1861_vm4, %v1856_v39, %v2276_v29  ;;  %v1867_v34 = vsel %vm1861_vm4, %v1857_v52, %v2277_v44 }
 0x558   :  { %v1873_v31 = vpack.c.bf16 %v1867_v34, %v1866_v51 }
 0x55a   :  { %2100 = vmatmul.msk.bf16.gmra.mxu2 %vm1912_vm5, %v1873_v31 }
 0x564   :  { %v2290_v58 = vpop.permute.xlu0 %2289 }
 0x565   :  { %v2292_v40 = vunpack.i.h.bf16 %v2290_v58  ;;  %v2291_v28 = vunpack.i.l.bf16 %v2290_v58 }
 0x567   :  { %v1868_v54 = vsel %vm1861_vm4, %v1858_v60, %v2291_v28  ;;  %v1869_v37 = vsel %vm1861_vm4, %v1859_v46, %v2292_v40 }
 0x568   :  { %v1874_v33 = vpack.c.bf16 %v1869_v37, %v1868_v54 }
 0x56a   :  { %2101 = vmatmul.msk.bf16.gmra.mxu2 %vm1912_vm5, %v1874_v33 }
 0x588   :  { %v1833_v61 = vpop.permute.xlu0 %1832 }
 0x5a8   :  { %v1761_v43 = vpop.permute.xlu2 %1760 }
 0x5a9   :  { %v1851_v14 = vsel %vm546_vm1, %v3628_v30, %v1761_v43 }
 0x5aa   :  { %v1860_v4 = vsel %vm85_vm0, %v1851_v14, %v1797_v16 }
 0x5ab   :  { %v1870_v5 = vsel %vm1861_vm4, %v1860_v4, %v1833_v61 }
 0x5ac   :  { %v1875_v59 = vpack.c.bf16 %v1870_v5, %v1870_v5 }
 0x5ae   :  { %2102 = vmatmul.msk.bf16.gmra.mxu2 %vm1912_vm5, %v1875_v59 }
 0x5b8   :  { %v1937_v0 = vpop.f32.mrf.mxu2 }
 0x5b9   :  { %v1938_v6 = vadd.f32 %v2295_v10, %v1937_v0 }
 0x5bb   :  { %1961 = vst.msk [vmem:[%s3801_s9] sm:$0xff] %vm85_vm0, %v1938_v6 }
 0x5c0   :  { %v1939_v30 = vpop.f32.mrf.mxu2 }
 0x5c1   :  { %v1940_v17 = vadd.f32 %v2295_v10, %v1939_v30 }
 0x5c3   :  { %1962 = vst.msk [vmem:[%s3801_s9 + $0x8] sm:$0xff] %vm85_vm0, %v1940_v17 }
 0x5c8   :  { %v1942_v3 = vpop.f32.mrf.mxu2 }
 0x5c9   :  { %v1943_v63 = vadd.f32 %v2295_v10, %v1942_v3 }
 0x5cb   :  { %1963 = vst.msk [vmem:[%s3801_s9 + $0x10] sm:$0xff] %vm85_vm0, %v1943_v63 }
 0x5d0   :  { %v1944_v36 = vpop.f32.mrf.mxu2 }
 0x5d1   :  { %v1945_v21 = vadd.f32 %v2295_v10, %v1944_v36 }
 0x5d3   :  { %1964 = vst.msk [vmem:[%s3801_s9 + $0x18] sm:$0xff] %vm85_vm0, %v1945_v21 }
 0x5dd   :  { %v1947_v49 = vpop.f32.mrf.mxu2 }
 0x5de   :  { %v1948_v42 = vadd.f32 %v2295_v10, %v1947_v49 }
 0x5e0   :  { %1965 = vst.msk [vmem:[%s3801_s9 + $0x20] sm:$0xff] %vm85_vm0, %v1948_v42 }
 0x5e5   :  { %v1949_v24 = vpop.f32.mrf.mxu2 }
 0x5e6   :  { %v1950_v27 = vadd.f32 %v2295_v10, %v1949_v24 }
 0x5e8   :  { %1966 = vst.msk [vmem:[%s3801_s9 + $0x28] sm:$0xff] %vm85_vm0, %v1950_v27 }
 0x5ed   :  { %v1952_v55 = vpop.f32.mrf.mxu2 }
 0x5ee   :  { %v1953_v48 = vadd.f32 %v2295_v10, %v1952_v55 }
 0x5f0   :  { %1967 = vst.msk [vmem:[%s3801_s9 + $0x30] sm:$0xff] %vm85_vm0, %v1953_v48 }
 0x5f5   :  { %v1954_v20 = vpop.f32.mrf.mxu2 }
 0x5f6   :  { %v1955_v11 = vadd.f32 %v2295_v10, %v1954_v20 }
 0x5f8   :  { %1968 = vst.msk [vmem:[%s3801_s9 + $0x38] sm:$0xff] %vm85_vm0, %v1955_v11 }
 0x631   :  { %v1957_v1 = vpop.f32.mrf.mxu2 }
 0x632   :  { %v1958_v8 = vadd.f32 %v2295_v10, %v1957_v1 }
 0x634   :  { %1969 = vst.msk [vmem:[%s3801_s9 + $0x40] sm:$0xff] %vm85_vm0, %v1958_v8 }
 0x639   :  { %v1959_v9 = vpop.f32.mrf.mxu2 }

</bundles_post_ra>
